<compile_context>
chip_gen: v5e
topology: v5e:2x2
jax: 0.10.0
libtpu: 0.0.40
codegen_flags: <defaults>
</compile_context>

<pallas_src>
import functools

import jax
import jax.numpy as jnp
from jax import lax
from jax.experimental import pallas as pl
from jax.experimental.pallas import tpu as pltpu


def _round_up(x, m):
    return ((x + m - 1) // m) * m


def _vmem_limit(need_bytes):
    # Default scoped VMEM (~16 MiB v5e / ~32 MiB v6e,v7x) is far below physical;
    # request what the kernel needs plus headroom, stay under physical VMEM.
    return int(min(max(need_bytes + (8 << 20), 32 << 20), 112 << 20))


def _pick_row_tile(b_pad, chunk_t, target_rows=1024):
    """Projection row tile: multiple of b_pad, divides chunk_t*b_pad blocks, ~target."""
    t_sub = max(1, min(chunk_t, max(1, target_rows // b_pad)))
    while chunk_t % t_sub:
        t_sub -= 1
    return b_pad * t_sub


# ----------------------------------------------------------------------------
# Kernel 1: time-independent input projection, row-tiled MXU matmul.
#   gates_x = x @ W_ih^T + (b_ih + b_hh)   (output in the compute dtype)
# ----------------------------------------------------------------------------
def _input_proj_kernel(x_ref, w_ref, b_ref, gx_ref):
    gx_ref[...] = (
        jnp.dot(x_ref[...], w_ref[...], preferred_element_type=jnp.float32)
        + b_ref[...]
    ).astype(gx_ref.dtype)


def input_projection(x2d, w_ih_t, bias, *, row_tile, gx_dtype):
    m, d = x2d.shape
    g = w_ih_t.shape[1]
    assert m % row_tile == 0
    grid = (m // row_tile,)

    gx_item = jnp.dtype(gx_dtype).itemsize
    vmem_need = (2 * row_tile * d * x2d.dtype.itemsize
                 + d * g * w_ih_t.dtype.itemsize
                 + g * 4
                 + 2 * row_tile * g * gx_item)
    cost = pl.CostEstimate(
        flops=int(2 * m * d * g),
        transcendentals=0,
        bytes_accessed=int(m * d * x2d.dtype.itemsize
                           + d * g * w_ih_t.dtype.itemsize
                           + m * g * gx_item),
    )
    return pl.pallas_call(
        _input_proj_kernel,
        out_shape=jax.ShapeDtypeStruct((m, g), gx_dtype),
        grid=grid,
        in_specs=[pl.BlockSpec((row_tile, d), lambda i: (i, 0)),
                  pl.BlockSpec((d, g), lambda i: (0, 0)),       # resident weight
                  pl.BlockSpec((1, g), lambda i: (0, 0))],      # folded bias (f32)
        out_specs=pl.BlockSpec((row_tile, g), lambda i: (i, 0)),
        compiler_params=pltpu.CompilerParams(
            dimension_semantics=("parallel",),
            vmem_limit_bytes=_vmem_limit(vmem_need)),
        cost_estimate=cost,
    )(x2d, w_ih_t, bias)


# ----------------------------------------------------------------------------
# Kernel 2: LSTM recurrence, time-chunked grid with carried (h, c) scratch.
#   gx is pre-reordered to gate order (i, f, o, g) and padded to H_pad lanes.
# ----------------------------------------------------------------------------
def _lstm_chunk_body(gx_ref, whh_ref, out_ref, hn_ref, h_ref, c_ref, *,
                     seq_len, chunk_t, hidden_pad, compute_dtype, unroll):
    k = pl.program_id(0)

    @pl.when(k == 0)
    def _():
        h_ref[...] = jnp.zeros_like(h_ref)
        c_ref[...] = jnp.zeros_like(c_ref)

    w_hh = whh_ref[...]                 # (H_pad, 4*H_pad), resident across all chunks
    hp = hidden_pad
    t0 = k * chunk_t

    def step(tl, carry):
        h_prev, c_prev = carry
        # Only the hidden->gates matmul is on the serial critical path.
        gates = gx_ref[tl].astype(jnp.float32) + jnp.dot(
            h_prev.astype(compute_dtype), w_hh,
            preferred_element_type=jnp.float32)             # (B_pad, 4H_pad) i,f,o,g
        sig = jax.nn.sigmoid(gates[:, :3 * hp])              # one EUP pass for i,f,o
        i_g = sig[:, 0 * hp:1 * hp]
        f_g = sig[:, 1 * hp:2 * hp]
        o_g = sig[:, 2 * hp:3 * hp]
        g_g = jnp.tanh(gates[:, 3 * hp:])
        c_new = f_g * c_prev + i_g * g_g
        h_new = o_g * jnp.tanh(c_new)
        valid = (t0 + tl) < seq_len                          # mask padded timesteps
        h_new = jnp.where(valid, h_new, h_prev)
        c_new = jnp.where(valid, c_new, c_prev)
        if out_ref is not None:
            out_ref[tl] = h_new.astype(out_ref.dtype)        # stays in VMEM slab
        return h_new, c_new

    h_fin, c_fin = lax.fori_loop(0, chunk_t, step, (h_ref[...], c_ref[...]),
                                 unroll=unroll)
    h_ref[...] = h_fin
    c_ref[...] = c_fin

    @pl.when(k == pl.num_programs(0) - 1)
    def _():
        hn_ref[...] = h_fin


def _lstm_last_kernel(gx_ref, whh_ref, hn_ref, h_ref, c_ref, **kw):
    # Last layer: only hn is produced; the per-step sequence is never materialized.
    _lstm_chunk_body(gx_ref, whh_ref, None, hn_ref, h_ref, c_ref, **kw)


def _lstm_seq_kernel(gx_ref, whh_ref, out_ref, hn_ref, h_ref, c_ref, **kw):
    # Inner layer: also emit the hidden sequence (per-chunk VMEM slab writeback).
    _lstm_chunk_body(gx_ref, whh_ref, out_ref, hn_ref, h_ref, c_ref, **kw)


def lstm_recurrence(gx, w_hh_t, *, seq_len, chunk_t, hidden_pad, return_seq,
                    seq_dtype):
    """gx: (T_pad, B_pad, 4*H_pad) precomputed input gates; w_hh_t: (H_pad, 4*H_pad)."""
    t_pad, b_pad, g_pad = gx.shape
    hp = hidden_pad
    num_chunks = t_pad // chunk_t
    cdt = w_hh_t.dtype

    # Shape-aware unroll: keep the live gate tile well inside the 64-vreg file.
    gate_vregs = max(1, (b_pad * g_pad * 4) // 4096)
    unroll = 8 if gate_vregs <= 8 else (4 if gate_vregs <= 16 else 2)
    unroll = max(1, min(unroll, chunk_t))

    common = dict(seq_len=seq_len, chunk_t=chunk_t, hidden_pad=hp,
                  compute_dtype=cdt, unroll=unroll)

    gx_spec = pl.BlockSpec((chunk_t, b_pad, g_pad), lambda k: (k, 0, 0))
    whh_spec = pl.BlockSpec((hp, g_pad), lambda k: (0, 0))       # resident
    hn_spec = pl.BlockSpec((b_pad, hp), lambda k: (0, 0))        # resident accumulator
    scratch = [pltpu.VMEM((b_pad, hp), jnp.float32),             # h carry
               pltpu.VMEM((b_pad, hp), jnp.float32)]             # c carry

    gx_chunk_bytes = chunk_t * b_pad * g_pad * gx.dtype.itemsize
    whh_bytes = hp * g_pad * w_hh_t.dtype.itemsize
    state_bytes = 3 * b_pad * hp * 4

    if return_seq:
        kernel = functools.partial(_lstm_seq_kernel, **common)
        out_item = jnp.dtype(seq_dtype).itemsize
        out_shape = (jax.ShapeDtypeStruct((t_pad, b_pad, hp), seq_dtype),
                     jax.ShapeDtypeStruct((b_pad, hp), jnp.float32))
        out_specs = (pl.BlockSpec((chunk_t, b_pad, hp), lambda k: (k, 0, 0)),
                     hn_spec)
        out_chunk_bytes = chunk_t * b_pad * hp * out_item
        out_total_bytes = t_pad * b_pad * hp * out_item
    else:
        kernel = functools.partial(_lstm_last_kernel, **common)
        out_shape = jax.ShapeDtypeStruct((b_pad, hp), jnp.float32)
        out_specs = hn_spec
        out_chunk_bytes = 0
        out_total_bytes = 0

    vmem_need = 2 * gx_chunk_bytes + whh_bytes + 2 * out_chunk_bytes + state_bytes
    cost = pl.CostEstimate(
        flops=int(t_pad * (2 * b_pad * hp * g_pad + 10 * b_pad * hp)),
        transcendentals=int(5 * t_pad * b_pad * hp),
        bytes_accessed=int(t_pad * b_pad * g_pad * gx.dtype.itemsize
                           + whh_bytes + out_total_bytes + b_pad * hp * 4),
    )
    return pl.pallas_call(
        kernel,
        out_shape=out_shape,
        grid=(num_chunks,),
        in_specs=[gx_spec, whh_spec],
        out_specs=out_specs,
        scratch_shapes=scratch,
        compiler_params=pltpu.CompilerParams(
            dimension_semantics=("arbitrary",),         # serial recurrence over time
            vmem_limit_bytes=_vmem_limit(vmem_need)),
        cost_estimate=cost,
    )(gx, w_hh_t)


# ----------------------------------------------------------------------------
# Parameters & forward wrapper
# ----------------------------------------------------------------------------
def init_encoder_params(key, input_dim, hidden_dim, num_layers=1):
    """Deterministic parameter init matching PyTorch nn.LSTM shapes/ranges."""
    k = 1.0 / jnp.sqrt(jnp.float32(hidden_dim))
    params = []
    d_in = input_dim
    for _ in range(num_layers):
        key, k1, k2, k3, k4 = jax.random.split(key, 5)
        w_ih = jax.random.uniform(k1, (4 * hidden_dim, d_in), jnp.float32, -k, k)
        w_hh = jax.random.uniform(k2, (4 * hidden_dim, hidden_dim), jnp.float32, -k, k)
        b_ih = jax.random.uniform(k3, (4 * hidden_dim,), jnp.float32, -k, k)
        b_hh = jax.random.uniform(k4, (4 * hidden_dim,), jnp.float32, -k, k)
        params.append((w_ih, w_hh, b_ih, b_hh))
        d_in = hidden_dim
    return params


def prepare_encoder_params(params, hidden_dim, compute_dtype=jnp.bfloat16):
    """Done ONCE outside jit: transpose, reorder gates to (i,f,o,g), pad H->H_pad.

    Padded gate columns/rows are zero so padded lanes of h/c provably stay zero.
    Bias (b_ih + b_hh) is folded, kept f32.  compute_dtype=bfloat16 is MXU-native
    (f32 accumulation is requested in-kernel); use float32 for bit-faithful numerics.
    """
    H = hidden_dim
    Hp = _round_up(H, 128)

    def reorder_pad_rows(w):
        # rows packed (i, f, g, o) -> (i, f, o, g); each gate block padded to Hp rows.
        blocks = [w[0:H], w[H:2 * H], w[3 * H:4 * H], w[2 * H:3 * H]]
        return jnp.concatenate(
            [jnp.pad(b, ((0, Hp - H), (0, 0))) for b in blocks], axis=0)

    def reorder_pad_bias(b):
        blocks = [b[0:H], b[H:2 * H], b[3 * H:4 * H], b[2 * H:3 * H]]
        return jnp.concatenate([jnp.pad(x, ((0, Hp - H),)) for x in blocks], axis=0)

    prepared = []
    for li, (w_ih, w_hh, b_ih, b_hh) in enumerate(params):
        d_in = w_ih.shape[1]
        d_in_pad = Hp if li > 0 else d_in          # inner layers consume padded out_seq

        w_ih_r = reorder_pad_rows(w_ih)                              # (4Hp, d_in)
        w_ih_r = jnp.pad(w_ih_r, ((0, 0), (0, d_in_pad - d_in)))
        w_hh_r = reorder_pad_rows(w_hh)                              # (4Hp, H)
        w_hh_r = jnp.pad(w_hh_r, ((0, 0), (0, Hp - H)))              # pad h input dim
        bias = reorder_pad_bias(b_ih + b_hh).reshape(1, -1)

        prepared.append((
            jnp.asarray(w_ih_r.T, compute_dtype),                    # (d_in_pad, 4Hp)
            jnp.asarray(w_hh_r.T, compute_dtype),                    # (Hp, 4Hp)
            jnp.asarray(bias, jnp.float32),                          # (1, 4Hp)
        ))
    return prepared


@functools.partial(jax.jit, static_argnames=("hidden_dim",))
def encoder_rnn_forward(x, prepared_params, *, hidden_dim):
    """Equivalent of EncoderRNN.forward(x) with zero (h0, c0).

    x: (B, T, input_dim); returns hn reshaped to (num_layers * B, hidden_dim).
    """
    B, T, _ = x.shape
    H = hidden_dim
    Hp = _round_up(H, 128)
    Bp = _round_up(B, 8)
    chunk_t = min(32, _round_up(T, 8))
    Tp = _round_up(T, chunk_t)
    n_layers = len(prepared_params)

    cdt = prepared_params[0][0].dtype
    gx_dtype = cdt               # bf16 gate slab when weights are bf16 (f32 accum)

    # Time-major + pad + cast fused in one XLA pass (no standalone transpose pass).
    x_tm = jnp.transpose(x.astype(jnp.float32), (1, 0, 2))
    x_tm = jnp.pad(x_tm, ((0, Tp - T), (0, Bp - B), (0, 0))).astype(cdt)

    hns = []
    layer_in = x_tm
    for li, (w_ih_t, w_hh_t, bias) in enumerate(prepared_params):
        d_in = w_ih_t.shape[0]
        row_tile = _pick_row_tile(Bp, chunk_t)
        gx = input_projection(layer_in.reshape(Tp * Bp, d_in), w_ih_t, bias,
                              row_tile=row_tile, gx_dtype=gx_dtype)
        gx = gx.reshape(Tp, Bp, 4 * Hp)
        if li == n_layers - 1:
            hn = lstm_recurrence(gx, w_hh_t, seq_len=T, chunk_t=chunk_t,
                                 hidden_pad=Hp, return_seq=False, seq_dtype=cdt)
        else:
            out_seq, hn = lstm_recurrence(gx, w_hh_t, seq_len=T, chunk_t=chunk_t,
                                          hidden_pad=Hp, return_seq=True,
                                          seq_dtype=cdt)
            layer_in = out_seq
        hns.append(hn[:B, :H])                    # strip batch/lane padding
    # PyTorch: hn is (num_layers, B, H); hn.view(-1, H) -> (num_layers * B, H)
    return jnp.concatenate(hns, axis=0)


# ----------------------------------------------------------------------------
# Pure-JAX reference (lax.scan) mirroring nn.LSTM semantics
# ----------------------------------------------------------------------------
def _lstm_reference(x, params, hidden_dim):
    B = x.shape[0]
    layer_in = jnp.transpose(x.astype(jnp.float32), (1, 0, 2))
    hns = []
    for (w_ih, w_hh, b_ih, b_hh) in params:
        H = hidden_dim

        def step(carry, x_t, w_ih=w_ih, w_hh=w_hh, b_ih=b_ih, b_hh=b_hh):
            h, c = carry
            g = x_t @ w_ih.T + h @ w_hh.T + b_ih + b_hh
            i = jax.nn.sigmoid(g[:, :H])
            f = jax.nn.sigmoid(g[:, H:2 * H])
            gg = jnp.tanh(g[:, 2 * H:3 * H])
            o = jax.nn.sigmoid(g[:, 3 * H:])
            c = f * c + i * gg
            h = o * jnp.tanh(c)
            return (h, c), h

        (h_last, _), out_seq = lax.scan(
            step,
            (jnp.zeros((B, H), jnp.float32), jnp.zeros((B, H), jnp.float32)),
            layer_in)
        hns.append(h_last)
        layer_in = out_seq
    return jnp.concatenate(hns, axis=0)


if __name__ == "__main__":
    B, T, INPUT_DIM, HIDDEN_DIM = 2, 8, 16, 32

    key = jax.random.PRNGKey(0)
    key, xkey = jax.random.split(key)
    x = jax.random.normal(xkey, (B, T, INPUT_DIM), dtype=jnp.float32)

    # --- 1 layer (EncoderRNN default), float32 weights: bit-close to reference ------
    params1 = init_encoder_params(key, INPUT_DIM, HIDDEN_DIM, num_layers=1)
    ref1 = _lstm_reference(x, params1, HIDDEN_DIM)
    hn_f32 = jax.block_until_ready(encoder_rnn_forward(
        x, prepare_encoder_params(params1, HIDDEN_DIM, jnp.float32),
        hidden_dim=HIDDEN_DIM))
    assert hn_f32.shape == (1 * B, HIDDEN_DIM), hn_f32.shape
    assert jnp.allclose(hn_f32, ref1, atol=1e-4, rtol=1e-4), (
        float(jnp.max(jnp.abs(hn_f32 - ref1))))

    # --- bf16 weights / gx (production path): f32 accumulation & gate math ----------
    hn_bf16 = jax.block_until_ready(encoder_rnn_forward(
        x, prepare_encoder_params(params1, HIDDEN_DIM, jnp.bfloat16),
        hidden_dim=HIDDEN_DIM))
    assert jnp.allclose(hn_bf16, ref1, atol=5e-2, rtol=5e-2), (
        float(jnp.max(jnp.abs(hn_bf16 - ref1))))

    # --- T not a multiple of the time chunk: exercises the padded-timestep mask -----
    T_odd = 11
    key, xkey2 = jax.random.split(key)
    x_odd = jax.random.normal(xkey2, (B, T_odd, INPUT_DIM), dtype=jnp.float32)
    ref_odd = _lstm_reference(x_odd, params1, HIDDEN_DIM)
    hn_odd = jax.block_until_ready(encoder_rnn_forward(
        x_odd, prepare_encoder_params(params1, HIDDEN_DIM, jnp.float32),
        hidden_dim=HIDDEN_DIM))
    assert jnp.allclose(hn_odd, ref_odd, atol=1e-4, rtol=1e-4), (
        float(jnp.max(jnp.abs(hn_odd - ref_odd))))

    # --- 2 layers: exercises the sequence-emitting kernel for inner layers ----------
    params2 = init_encoder_params(key, INPUT_DIM, HIDDEN_DIM, num_layers=2)
    ref2 = _lstm_reference(x, params2, HIDDEN_DIM)
    hn2 = jax.block_until_ready(encoder_rnn_forward(
        x, prepare_encoder_params(params2, HIDDEN_DIM, jnp.float32),
        hidden_dim=HIDDEN_DIM))
    assert hn2.shape == (2 * B, HIDDEN_DIM), hn2.shape
    assert jnp.allclose(hn2, ref2, atol=1e-4, rtol=1e-4), (
        float(jnp.max(jnp.abs(hn2 - ref2))))

    print("KERNEL_OK")
</pallas_src>

<mosaic_0001>
module attributes {stable_mosaic.version = 11 : i64} {
  func.func @_input_proj_kernel(%arg0: i32, %arg1: memref<64x16xf32, #tpu.memory_space<vmem>>, %arg2: memref<16x512xf32, #tpu.memory_space<vmem>>, %arg3: memref<1x512xf32, #tpu.memory_space<vmem>>, %arg4: memref<64x512xf32, #tpu.memory_space<vmem>>) attributes {dimension_semantics = [#tpu.dimension_semantics<parallel>], iteration_bounds = array<i64: 1>, scalar_prefetch = 0 : i64, scratch_operands = 0 : i64, tpu.core_type = #tpu.core_type<tc>, window_params = [{transform_indices = @transform_0, window_bounds = array<i64: 64, 16>}, {pipeline_mode = #tpu.pipeline_mode<synchronous>, transform_indices = @transform_1, window_bounds = array<i64: 16, 512>}, {pipeline_mode = #tpu.pipeline_mode<synchronous>, transform_indices = @transform_2, window_bounds = array<i64: 1, 512>}, {transform_indices = @transform_3, window_bounds = array<i64: 64, 512>}]} {
    %c0 = arith.constant 0 : index
    %c0_0 = arith.constant 0 : index
    %0 = vector.load %arg1[%c0, %c0_0] : memref<64x16xf32, #tpu.memory_space<vmem>>, vector<64x16xf32>
    %c0_1 = arith.constant 0 : index
    %c0_2 = arith.constant 0 : index
    %1 = vector.load %arg2[%c0_1, %c0_2] : memref<16x512xf32, #tpu.memory_space<vmem>>, vector<16x512xf32>
    %cst = arith.constant dense<0.000000e+00> : vector<64x512xf32>
    %2 = tpu.matmul %0, %1, %cst {dimension_numbers = #tpu.dot_dimension_numbers<[1], [0], [0], [1], [0, 0, 1, 1], [], []>} : vector<64x16xf32>, vector<16x512xf32>, vector<64x512xf32> -> vector<64x512xf32>
    %c0_3 = arith.constant 0 : index
    %c0_4 = arith.constant 0 : index
    %3 = vector.load %arg3[%c0_3, %c0_4] : memref<1x512xf32, #tpu.memory_space<vmem>>, vector<1x512xf32>
    %4 = vector.broadcast %3 : vector<1x512xf32> to vector<64x512xf32>
    %5 = arith.addf %2, %4 : vector<64x512xf32>
    %c0_5 = arith.constant 0 : index
    %c0_6 = arith.constant 0 : index
    %6 = vector.load %arg4[%c0_5, %c0_6] : memref<64x512xf32, #tpu.memory_space<vmem>>, vector<64x512xf32>
    tpu.vector_store %arg4[%c0_5, %c0_6], %5 {strides = array<i32>} : memref<64x512xf32, #tpu.memory_space<vmem>>, vector<64x512xf32>,
    return
  }
  func.func @transform_0(%arg0: i32) -> (i32, i32) {
    %c0_i32 = arith.constant 0 : i32
    %c0_i32_0 = arith.constant 0 : i32
    return %arg0, %c0_i32 : i32, i32
  }
  func.func @transform_1(%arg0: i32) -> (i32, i32) {
    %c0_i32 = arith.constant 0 : i32
    %c0_i32_0 = arith.constant 0 : i32
    %c0_i32_1 = arith.constant 0 : i32
    return %c0_i32, %c0_i32_0 : i32, i32
  }
  func.func @transform_2(%arg0: i32) -> (i32, i32) {
    %c0_i32 = arith.constant 0 : i32
    %c0_i32_0 = arith.constant 0 : i32
    %c0_i32_1 = arith.constant 0 : i32
    return %c0_i32, %c0_i32_0 : i32, i32
  }
  func.func @transform_3(%arg0: i32) -> (i32, i32) {
    %c0_i32 = arith.constant 0 : i32
    %c0_i32_0 = arith.constant 0 : i32
    return %arg0, %c0_i32 : i32, i32
  }
}

module attributes {stable_mosaic.version = 11 : i64} {
  func.func @_lstm_last_kernel(%arg0: i32, %arg1: memref<8x8x512xf32, #tpu.memory_space<vmem>>, %arg2: memref<128x512xf32, #tpu.memory_space<vmem>>, %arg3: memref<8x128xf32, #tpu.memory_space<vmem>>, %arg4: memref<8x128xf32, #tpu.memory_space<vmem>>, %arg5: memref<8x128xf32, #tpu.memory_space<vmem>>) attributes {dimension_semantics = [#tpu.dimension_semantics<arbitrary>], iteration_bounds = array<i64: 1>, scalar_prefetch = 0 : i64, scratch_operands = 2 : i64, tpu.core_type = #tpu.core_type<tc>, window_params = [{transform_indices = @transform_0, window_bounds = array<i64: 8, 8, 512>}, {pipeline_mode = #tpu.pipeline_mode<synchronous>, transform_indices = @transform_1, window_bounds = array<i64: 128, 512>}, {pipeline_mode = #tpu.pipeline_mode<synchronous>, transform_indices = @transform_2, window_bounds = array<i64: 8, 128>}]} {
    %c0_i32 = arith.constant 0 : i32
    %0 = arith.cmpi eq, %arg0, %c0_i32 : i32
    %1 = arith.extui %0 : i1 to i32
    %c0_i32_0 = arith.constant 0 : i32
    %2 = arith.cmpi ne, %1, %c0_i32_0 : i32
    scf.if %2 {
      %cst_53 = arith.constant 0.000000e+00 : f32
      %212 = vector.broadcast %cst_53 : f32 to vector<8x128xf32>
      %c0_54 = arith.constant 0 : index
      %c0_55 = arith.constant 0 : index
      %213 = vector.load %arg4[%c0_54, %c0_55] : memref<8x128xf32, #tpu.memory_space<vmem>>, vector<8x128xf32>
      tpu.vector_store %arg4[%c0_54, %c0_55], %212 {strides = array<i32>} : memref<8x128xf32, #tpu.memory_space<vmem>>, vector<8x128xf32>,
      %cst_56 = arith.constant 0.000000e+00 : f32
      %214 = vector.broadcast %cst_56 : f32 to vector<8x128xf32>
      %c0_57 = arith.constant 0 : index
      %c0_58 = arith.constant 0 : index
      %215 = vector.load %arg5[%c0_57, %c0_58] : memref<8x128xf32, #tpu.memory_space<vmem>>, vector<8x128xf32>
      tpu.vector_store %arg5[%c0_57, %c0_58], %214 {strides = array<i32>} : memref<8x128xf32, #tpu.memory_space<vmem>>, vector<8x128xf32>,
    } else {
    }
    %c0 = arith.constant 0 : index
    %c0_1 = arith.constant 0 : index
    %3 = vector.load %arg2[%c0, %c0_1] : memref<128x512xf32, #tpu.memory_space<vmem>>, vector<128x512xf32>
    %c8_i32 = arith.constant 8 : i32
    %4 = arith.muli %arg0, %c8_i32 : i32
    %c0_2 = arith.constant 0 : index
    %c0_3 = arith.constant 0 : index
    %5 = vector.load %arg4[%c0_2, %c0_3] : memref<8x128xf32, #tpu.memory_space<vmem>>, vector<8x128xf32>
    %c0_4 = arith.constant 0 : index
    %c0_5 = arith.constant 0 : index
    %6 = vector.load %arg5[%c0_4, %c0_5] : memref<8x128xf32, #tpu.memory_space<vmem>>, vector<8x128xf32>
    %c0_i32_6 = arith.constant 0 : i32
    %7 = arith.index_cast %c0_i32_6 : i32 to index
    %c0_7 = arith.constant 0 : index
    %c0_8 = arith.constant 0 : index
    %8 = vector.load %arg1[%7, %c0_7, %c0_8] : memref<8x8x512xf32, #tpu.memory_space<vmem>>, vector<1x8x512xf32>
    %9 = vector.shape_cast %8 : vector<1x8x512xf32> to vector<8x512xf32>
    %cst = arith.constant dense<0.000000e+00> : vector<8x512xf32>
    %10 = tpu.matmul %5, %3, %cst {dimension_numbers = #tpu.dot_dimension_numbers<[1], [0], [0], [1], [0, 0, 1, 1], [], []>} : vector<8x128xf32>, vector<128x512xf32>, vector<8x512xf32> -> vector<8x512xf32>
    %11 = arith.addf %9, %10 : vector<8x512xf32>
    %12 = vector.extract_strided_slice %11 {offsets = [0, 0], sizes = [8, 384], strides = [1, 1]} : vector<8x512xf32> to vector<8x384xf32>
    %13 = arith.negf %12 : vector<8x384xf32>
    %14 = math.exp %13 : vector<8x384xf32>
    %cst_9 = arith.constant 1.000000e+00 : f32
    %15 = vector.broadcast %cst_9 : f32 to vector<8x384xf32>
    %16 = arith.addf %15, %14 : vector<8x384xf32>
    %17 = arith.divf %15, %16 : vector<8x384xf32>
    %18 = vector.extract_strided_slice %17 {offsets = [0, 0], sizes = [8, 128], strides = [1, 1]} : vector<8x384xf32> to vector<8x128xf32>
    %19 = vector.extract_strided_slice %17 {offsets = [0, 128], sizes = [8, 128], strides = [1, 1]} : vector<8x384xf32> to vector<8x128xf32>
    %20 = vector.extract_strided_slice %17 {offsets = [0, 256], sizes = [8, 128], strides = [1, 1]} : vector<8x384xf32> to vector<8x128xf32>
    %21 = vector.extract_strided_slice %11 {offsets = [0, 384], sizes = [8, 128], strides = [1, 1]} : vector<8x512xf32> to vector<8x128xf32>
    %22 = math.tanh %21 : vector<8x128xf32>
    %23 = arith.mulf %19, %6 : vector<8x128xf32>
    %24 = arith.mulf %18, %22 : vector<8x128xf32>
    %25 = arith.addf %23, %24 : vector<8x128xf32>
    %26 = math.tanh %25 : vector<8x128xf32>
    %27 = arith.mulf %20, %26 : vector<8x128xf32>
    %28 = arith.addi %4, %c0_i32_6 : i32
    %c8_i32_10 = arith.constant 8 : i32
    %29 = arith.cmpi slt, %28, %c8_i32_10 : i32
    %30 = arith.select %29, %27, %5 : vector<8x128xf32>
    %31 = arith.select %29, %25, %6 : vector<8x128xf32>
    %c1_i32 = arith.constant 1 : i32
    %32 = arith.index_cast %c1_i32 : i32 to index
    %c0_11 = arith.constant 0 : index
    %c0_12 = arith.constant 0 : index
    %33 = vector.load %arg1[%32, %c0_11, %c0_12] : memref<8x8x512xf32, #tpu.memory_space<vmem>>, vector<1x8x512xf32>
    %34 = vector.shape_cast %33 : vector<1x8x512xf32> to vector<8x512xf32>
    %cst_13 = arith.constant dense<0.000000e+00> : vector<8x512xf32>
    %35 = tpu.matmul %30, %3, %cst_13 {dimension_numbers = #tpu.dot_dimension_numbers<[1], [0], [0], [1], [0, 0, 1, 1], [], []>} : vector<8x128xf32>, vector<128x512xf32>, vector<8x512xf32> -> vector<8x512xf32>
    %36 = arith.addf %34, %35 : vector<8x512xf32>
    %37 = vector.extract_strided_slice %36 {offsets = [0, 0], sizes = [8, 384], strides = [1, 1]} : vector<8x512xf32> to vector<8x384xf32>
    %38 = arith.negf %37 : vector<8x384xf32>
    %39 = math.exp %38 : vector<8x384xf32>
    %cst_14 = arith.constant 1.000000e+00 : f32
    %40 = vector.broadcast %cst_14 : f32 to vector<8x384xf32>
    %41 = arith.addf %40, %39 : vector<8x384xf32>
    %42 = arith.divf %40, %41 : vector<8x384xf32>
    %43 = vector.extract_strided_slice %42 {offsets = [0, 0], sizes = [8, 128], strides = [1, 1]} : vector<8x384xf32> to vector<8x128xf32>
    %44 = vector.extract_strided_slice %42 {offsets = [0, 128], sizes = [8, 128], strides = [1, 1]} : vector<8x384xf32> to vector<8x128xf32>
    %45 = vector.extract_strided_slice %42 {offsets = [0, 256], sizes = [8, 128], strides = [1, 1]} : vector<8x384xf32> to vector<8x128xf32>
    %46 = vector.extract_strided_slice %36 {offsets = [0, 384], sizes = [8, 128], strides = [1, 1]} : vector<8x512xf32> to vector<8x128xf32>
    %47 = math.tanh %46 : vector<8x128xf32>
    %48 = arith.mulf %44, %31 : vector<8x128xf32>
    %49 = arith.mulf %43, %47 : vector<8x128xf32>
    %50 = arith.addf %48, %49 : vector<8x128xf32>
    %51 = math.tanh %50 : vector<8x128xf32>
    %52 = arith.mulf %45, %51 : vector<8x128xf32>
    %53 = arith.addi %4, %c1_i32 : i32
    %c8_i32_15 = arith.constant 8 : i32
    %54 = arith.cmpi slt, %53, %c8_i32_15 : i32
    %55 = arith.select %54, %52, %30 : vector<8x128xf32>
    %56 = arith.select %54, %50, %31 : vector<8x128xf32>
    %c2_i32 = arith.constant 2 : i32
    %57 = arith.index_cast %c2_i32 : i32 to index
    %c0_16 = arith.constant 0 : index
    %c0_17 = arith.constant 0 : index
    %58 = vector.load %arg1[%57, %c0_16, %c0_17] : memref<8x8x512xf32, #tpu.memory_space<vmem>>, vector<1x8x512xf32>
    %59 = vector.shape_cast %58 : vector<1x8x512xf32> to vector<8x512xf32>
    %cst_18 = arith.constant dense<0.000000e+00> : vector<8x512xf32>
    %60 = tpu.matmul %55, %3, %cst_18 {dimension_numbers = #tpu.dot_dimension_numbers<[1], [0], [0], [1], [0, 0, 1, 1], [], []>} : vector<8x128xf32>, vector<128x512xf32>, vector<8x512xf32> -> vector<8x512xf32>
    %61 = arith.addf %59, %60 : vector<8x512xf32>
    %62 = vector.extract_strided_slice %61 {offsets = [0, 0], sizes = [8, 384], strides = [1, 1]} : vector<8x512xf32> to vector<8x384xf32>
    %63 = arith.negf %62 : vector<8x384xf32>
    %64 = math.exp %63 : vector<8x384xf32>
    %cst_19 = arith.constant 1.000000e+00 : f32
    %65 = vector.broadcast %cst_19 : f32 to vector<8x384xf32>
    %66 = arith.addf %65, %64 : vector<8x384xf32>
    %67 = arith.divf %65, %66 : vector<8x384xf32>
    %68 = vector.extract_strided_slice %67 {offsets = [0, 0], sizes = [8, 128], strides = [1, 1]} : vector<8x384xf32> to vector<8x128xf32>
    %69 = vector.extract_strided_slice %67 {offsets = [0, 128], sizes = [8, 128], strides = [1, 1]} : vector<8x384xf32> to vector<8x128xf32>
    %70 = vector.extract_strided_slice %67 {offsets = [0, 256], sizes = [8, 128], strides = [1, 1]} : vector<8x384xf32> to vector<8x128xf32>
    %71 = vector.extract_strided_slice %61 {offsets = [0, 384], sizes = [8, 128], strides = [1, 1]} : vector<8x512xf32> to vector<8x128xf32>
    %72 = math.tanh %71 : vector<8x128xf32>
    %73 = arith.mulf %69, %56 : vector<8x128xf32>
    %74 = arith.mulf %68, %72 : vector<8x128xf32>
    %75 = arith.addf %73, %74 : vector<8x128xf32>
    %76 = math.tanh %75 : vector<8x128xf32>
    %77 = arith.mulf %70, %76 : vector<8x128xf32>
    %78 = arith.addi %4, %c2_i32 : i32
    %c8_i32_20 = arith.constant 8 : i32
    %79 = arith.cmpi slt, %78, %c8_i32_20 : i32
    %80 = arith.select %79, %77, %55 : vector<8x128xf32>
    %81 = arith.select %79, %75, %56 : vector<8x128xf32>
    %c3_i32 = arith.constant 3 : i32
    %82 = arith.index_cast %c3_i32 : i32 to index
    %c0_21 = arith.constant 0 : index
    %c0_22 = arith.constant 0 : index
    %83 = vector.load %arg1[%82, %c0_21, %c0_22] : memref<8x8x512xf32, #tpu.memory_space<vmem>>, vector<1x8x512xf32>
    %84 = vector.shape_cast %83 : vector<1x8x512xf32> to vector<8x512xf32>
    %cst_23 = arith.constant dense<0.000000e+00> : vector<8x512xf32>
    %85 = tpu.matmul %80, %3, %cst_23 {dimension_numbers = #tpu.dot_dimension_numbers<[1], [0], [0], [1], [0, 0, 1, 1], [], []>} : vector<8x128xf32>, vector<128x512xf32>, vector<8x512xf32> -> vector<8x512xf32>
    %86 = arith.addf %84, %85 : vector<8x512xf32>
    %87 = vector.extract_strided_slice %86 {offsets = [0, 0], sizes = [8, 384], strides = [1, 1]} : vector<8x512xf32> to vector<8x384xf32>
    %88 = arith.negf %87 : vector<8x384xf32>
    %89 = math.exp %88 : vector<8x384xf32>
    %cst_24 = arith.constant 1.000000e+00 : f32
    %90 = vector.broadcast %cst_24 : f32 to vector<8x384xf32>
    %91 = arith.addf %90, %89 : vector<8x384xf32>
    %92 = arith.divf %90, %91 : vector<8x384xf32>
    %93 = vector.extract_strided_slice %92 {offsets = [0, 0], sizes = [8, 128], strides = [1, 1]} : vector<8x384xf32> to vector<8x128xf32>
    %94 = vector.extract_strided_slice %92 {offsets = [0, 128], sizes = [8, 128], strides = [1, 1]} : vector<8x384xf32> to vector<8x128xf32>
    %95 = vector.extract_strided_slice %92 {offsets = [0, 256], sizes = [8, 128], strides = [1, 1]} : vector<8x384xf32> to vector<8x128xf32>
    %96 = vector.extract_strided_slice %86 {offsets = [0, 384], sizes = [8, 128], strides = [1, 1]} : vector<8x512xf32> to vector<8x128xf32>
    %97 = math.tanh %96 : vector<8x128xf32>
    %98 = arith.mulf %94, %81 : vector<8x128xf32>
    %99 = arith.mulf %93, %97 : vector<8x128xf32>
    %100 = arith.addf %98, %99 : vector<8x128xf32>
    %101 = math.tanh %100 : vector<8x128xf32>
    %102 = arith.mulf %95, %101 : vector<8x128xf32>
    %103 = arith.addi %4, %c3_i32 : i32
    %c8_i32_25 = arith.constant 8 : i32
    %104 = arith.cmpi slt, %103, %c8_i32_25 : i32
    %105 = arith.select %104, %102, %80 : vector<8x128xf32>
    %106 = arith.select %104, %100, %81 : vector<8x128xf32>
    %c4_i32 = arith.constant 4 : i32
    %107 = arith.index_cast %c4_i32 : i32 to index
    %c0_26 = arith.constant 0 : index
    %c0_27 = arith.constant 0 : index
    %108 = vector.load %arg1[%107, %c0_26, %c0_27] : memref<8x8x512xf32, #tpu.memory_space<vmem>>, vector<1x8x512xf32>
    %109 = vector.shape_cast %108 : vector<1x8x512xf32> to vector<8x512xf32>
    %cst_28 = arith.constant dense<0.000000e+00> : vector<8x512xf32>
    %110 = tpu.matmul %105, %3, %cst_28 {dimension_numbers = #tpu.dot_dimension_numbers<[1], [0], [0], [1], [0, 0, 1, 1], [], []>} : vector<8x128xf32>, vector<128x512xf32>, vector<8x512xf32> -> vector<8x512xf32>
    %111 = arith.addf %109, %110 : vector<8x512xf32>
    %112 = vector.extract_strided_slice %111 {offsets = [0, 0], sizes = [8, 384], strides = [1, 1]} : vector<8x512xf32> to vector<8x384xf32>
    %113 = arith.negf %112 : vector<8x384xf32>
    %114 = math.exp %113 : vector<8x384xf32>
    %cst_29 = arith.constant 1.000000e+00 : f32
    %115 = vector.broadcast %cst_29 : f32 to vector<8x384xf32>
    %116 = arith.addf %115, %114 : vector<8x384xf32>
    %117 = arith.divf %115, %116 : vector<8x384xf32>
    %118 = vector.extract_strided_slice %117 {offsets = [0, 0], sizes = [8, 128], strides = [1, 1]} : vector<8x384xf32> to vector<8x128xf32>
    %119 = vector.extract_strided_slice %117 {offsets = [0, 128], sizes = [8, 128], strides = [1, 1]} : vector<8x384xf32> to vector<8x128xf32>
    %120 = vector.extract_strided_slice %117 {offsets = [0, 256], sizes = [8, 128], strides = [1, 1]} : vector<8x384xf32> to vector<8x128xf32>
    %121 = vector.extract_strided_slice %111 {offsets = [0, 384], sizes = [8, 128], strides = [1, 1]} : vector<8x512xf32> to vector<8x128xf32>
    %122 = math.tanh %121 : vector<8x128xf32>
    %123 = arith.mulf %119, %106 : vector<8x128xf32>
    %124 = arith.mulf %118, %122 : vector<8x128xf32>
    %125 = arith.addf %123, %124 : vector<8x128xf32>
    %126 = math.tanh %125 : vector<8x128xf32>
    %127 = arith.mulf %120, %126 : vector<8x128xf32>
    %128 = arith.addi %4, %c4_i32 : i32
    %c8_i32_30 = arith.constant 8 : i32
    %129 = arith.cmpi slt, %128, %c8_i32_30 : i32
    %130 = arith.select %129, %127, %105 : vector<8x128xf32>
    %131 = arith.select %129, %125, %106 : vector<8x128xf32>
    %c5_i32 = arith.constant 5 : i32
    %132 = arith.index_cast %c5_i32 : i32 to index
    %c0_31 = arith.constant 0 : index
    %c0_32 = arith.constant 0 : index
    %133 = vector.load %arg1[%132, %c0_31, %c0_32] : memref<8x8x512xf32, #tpu.memory_space<vmem>>, vector<1x8x512xf32>
    %134 = vector.shape_cast %133 : vector<1x8x512xf32> to vector<8x512xf32>
    %cst_33 = arith.constant dense<0.000000e+00> : vector<8x512xf32>
    %135 = tpu.matmul %130, %3, %cst_33 {dimension_numbers = #tpu.dot_dimension_numbers<[1], [0], [0], [1], [0, 0, 1, 1], [], []>} : vector<8x128xf32>, vector<128x512xf32>, vector<8x512xf32> -> vector<8x512xf32>
    %136 = arith.addf %134, %135 : vector<8x512xf32>
    %137 = vector.extract_strided_slice %136 {offsets = [0, 0], sizes = [8, 384], strides = [1, 1]} : vector<8x512xf32> to vector<8x384xf32>
    %138 = arith.negf %137 : vector<8x384xf32>
    %139 = math.exp %138 : vector<8x384xf32>
    %cst_34 = arith.constant 1.000000e+00 : f32
    %140 = vector.broadcast %cst_34 : f32 to vector<8x384xf32>
    %141 = arith.addf %140, %139 : vector<8x384xf32>
    %142 = arith.divf %140, %141 : vector<8x384xf32>
    %143 = vector.extract_strided_slice %142 {offsets = [0, 0], sizes = [8, 128], strides = [1, 1]} : vector<8x384xf32> to vector<8x128xf32>
    %144 = vector.extract_strided_slice %142 {offsets = [0, 128], sizes = [8, 128], strides = [1, 1]} : vector<8x384xf32> to vector<8x128xf32>
    %145 = vector.extract_strided_slice %142 {offsets = [0, 256], sizes = [8, 128], strides = [1, 1]} : vector<8x384xf32> to vector<8x128xf32>
    %146 = vector.extract_strided_slice %136 {offsets = [0, 384], sizes = [8, 128], strides = [1, 1]} : vector<8x512xf32> to vector<8x128xf32>
    %147 = math.tanh %146 : vector<8x128xf32>
    %148 = arith.mulf %144, %131 : vector<8x128xf32>
    %149 = arith.mulf %143, %147 : vector<8x128xf32>
    %150 = arith.addf %148, %149 : vector<8x128xf32>
    %151 = math.tanh %150 : vector<8x128xf32>
    %152 = arith.mulf %145, %151 : vector<8x128xf32>
    %153 = arith.addi %4, %c5_i32 : i32
    %c8_i32_35 = arith.constant 8 : i32
    %154 = arith.cmpi slt, %153, %c8_i32_35 : i32
    %155 = arith.select %154, %152, %130 : vector<8x128xf32>
    %156 = arith.select %154, %150, %131 : vector<8x128xf32>
    %c6_i32 = arith.constant 6 : i32
    %157 = arith.index_cast %c6_i32 : i32 to index
    %c0_36 = arith.constant 0 : index
    %c0_37 = arith.constant 0 : index
    %158 = vector.load %arg1[%157, %c0_36, %c0_37] : memref<8x8x512xf32, #tpu.memory_space<vmem>>, vector<1x8x512xf32>
    %159 = vector.shape_cast %158 : vector<1x8x512xf32> to vector<8x512xf32>
    %cst_38 = arith.constant dense<0.000000e+00> : vector<8x512xf32>
    %160 = tpu.matmul %155, %3, %cst_38 {dimension_numbers = #tpu.dot_dimension_numbers<[1], [0], [0], [1], [0, 0, 1, 1], [], []>} : vector<8x128xf32>, vector<128x512xf32>, vector<8x512xf32> -> vector<8x512xf32>
    %161 = arith.addf %159, %160 : vector<8x512xf32>
    %162 = vector.extract_strided_slice %161 {offsets = [0, 0], sizes = [8, 384], strides = [1, 1]} : vector<8x512xf32> to vector<8x384xf32>
    %163 = arith.negf %162 : vector<8x384xf32>
    %164 = math.exp %163 : vector<8x384xf32>
    %cst_39 = arith.constant 1.000000e+00 : f32
    %165 = vector.broadcast %cst_39 : f32 to vector<8x384xf32>
    %166 = arith.addf %165, %164 : vector<8x384xf32>
    %167 = arith.divf %165, %166 : vector<8x384xf32>
    %168 = vector.extract_strided_slice %167 {offsets = [0, 0], sizes = [8, 128], strides = [1, 1]} : vector<8x384xf32> to vector<8x128xf32>
    %169 = vector.extract_strided_slice %167 {offsets = [0, 128], sizes = [8, 128], strides = [1, 1]} : vector<8x384xf32> to vector<8x128xf32>
    %170 = vector.extract_strided_slice %167 {offsets = [0, 256], sizes = [8, 128], strides = [1, 1]} : vector<8x384xf32> to vector<8x128xf32>
    %171 = vector.extract_strided_slice %161 {offsets = [0, 384], sizes = [8, 128], strides = [1, 1]} : vector<8x512xf32> to vector<8x128xf32>
    %172 = math.tanh %171 : vector<8x128xf32>
    %173 = arith.mulf %169, %156 : vector<8x128xf32>
    %174 = arith.mulf %168, %172 : vector<8x128xf32>
    %175 = arith.addf %173, %174 : vector<8x128xf32>
    %176 = math.tanh %175 : vector<8x128xf32>
    %177 = arith.mulf %170, %176 : vector<8x128xf32>
    %178 = arith.addi %4, %c6_i32 : i32
    %c8_i32_40 = arith.constant 8 : i32
    %179 = arith.cmpi slt, %178, %c8_i32_40 : i32
    %180 = arith.select %179, %177, %155 : vector<8x128xf32>
    %181 = arith.select %179, %175, %156 : vector<8x128xf32>
    %c7_i32 = arith.constant 7 : i32
    %182 = arith.index_cast %c7_i32 : i32 to index
    %c0_41 = arith.constant 0 : index
    %c0_42 = arith.constant 0 : index
    %183 = vector.load %arg1[%182, %c0_41, %c0_42] : memref<8x8x512xf32, #tpu.memory_space<vmem>>, vector<1x8x512xf32>
    %184 = vector.shape_cast %183 : vector<1x8x512xf32> to vector<8x512xf32>
    %cst_43 = arith.constant dense<0.000000e+00> : vector<8x512xf32>
    %185 = tpu.matmul %180, %3, %cst_43 {dimension_numbers = #tpu.dot_dimension_numbers<[1], [0], [0], [1], [0, 0, 1, 1], [], []>} : vector<8x128xf32>, vector<128x512xf32>, vector<8x512xf32> -> vector<8x512xf32>
    %186 = arith.addf %184, %185 : vector<8x512xf32>
    %187 = vector.extract_strided_slice %186 {offsets = [0, 0], sizes = [8, 384], strides = [1, 1]} : vector<8x512xf32> to vector<8x384xf32>
    %188 = arith.negf %187 : vector<8x384xf32>
    %189 = math.exp %188 : vector<8x384xf32>
    %cst_44 = arith.constant 1.000000e+00 : f32
    %190 = vector.broadcast %cst_44 : f32 to vector<8x384xf32>
    %191 = arith.addf %190, %189 : vector<8x384xf32>
    %192 = arith.divf %190, %191 : vector<8x384xf32>
    %193 = vector.extract_strided_slice %192 {offsets = [0, 0], sizes = [8, 128], strides = [1, 1]} : vector<8x384xf32> to vector<8x128xf32>
    %194 = vector.extract_strided_slice %192 {offsets = [0, 128], sizes = [8, 128], strides = [1, 1]} : vector<8x384xf32> to vector<8x128xf32>
    %195 = vector.extract_strided_slice %192 {offsets = [0, 256], sizes = [8, 128], strides = [1, 1]} : vector<8x384xf32> to vector<8x128xf32>
    %196 = vector.extract_strided_slice %186 {offsets = [0, 384], sizes = [8, 128], strides = [1, 1]} : vector<8x512xf32> to vector<8x128xf32>
    %197 = math.tanh %196 : vector<8x128xf32>
    %198 = arith.mulf %194, %181 : vector<8x128xf32>
    %199 = arith.mulf %193, %197 : vector<8x128xf32>
    %200 = arith.addf %198, %199 : vector<8x128xf32>
    %201 = math.tanh %200 : vector<8x128xf32>
    %202 = arith.mulf %195, %201 : vector<8x128xf32>
    %203 = arith.addi %4, %c7_i32 : i32
    %c8_i32_45 = arith.constant 8 : i32
    %204 = arith.cmpi slt, %203, %c8_i32_45 : i32
    %205 = arith.select %204, %202, %180 : vector<8x128xf32>
    %206 = arith.select %204, %200, %181 : vector<8x128xf32>
    %c8_i32_46 = arith.constant 8 : i32
    %c0_47 = arith.constant 0 : index
    %c0_48 = arith.constant 0 : index
    %207 = vector.load %arg4[%c0_47, %c0_48] : memref<8x128xf32, #tpu.memory_space<vmem>>, vector<8x128xf32>
    tpu.vector_store %arg4[%c0_47, %c0_48], %205 {strides = array<i32>} : memref<8x128xf32, #tpu.memory_space<vmem>>, vector<8x128xf32>,
    %c0_49 = arith.constant 0 : index
    %c0_50 = arith.constant 0 : index
    %208 = vector.load %arg5[%c0_49, %c0_50] : memref<8x128xf32, #tpu.memory_space<vmem>>, vector<8x128xf32>
    tpu.vector_store %arg5[%c0_49, %c0_50], %206 {strides = array<i32>} : memref<8x128xf32, #tpu.memory_space<vmem>>, vector<8x128xf32>,
    %c0_i32_51 = arith.constant 0 : i32
    %209 = arith.cmpi eq, %arg0, %c0_i32_51 : i32
    %210 = arith.extui %209 : i1 to i32
    %c0_i32_52 = arith.constant 0 : i32
    %211 = arith.cmpi ne, %210, %c0_i32_52 : i32
    scf.if %211 {
      %c0_53 = arith.constant 0 : index
      %c0_54 = arith.constant 0 : index
      %212 = vector.load %arg3[%c0_53, %c0_54] : memref<8x128xf32, #tpu.memory_space<vmem>>, vector<8x128xf32>
      tpu.vector_store %arg3[%c0_53, %c0_54], %205 {strides = array<i32>} : memref<8x128xf32, #tpu.memory_space<vmem>>, vector<8x128xf32>,
    } else {
    }
    return
  }
  func.func @transform_0(%arg0: i32) -> (i32, i32, i32) {
    %c0_i32 = arith.constant 0 : i32
    %c0_i32_0 = arith.constant 0 : i32
    %c0_i32_1 = arith.constant 0 : i32
    return %arg0, %c0_i32, %c0_i32_0 : i32, i32, i32
  }
  func.func @transform_1(%arg0: i32) -> (i32, i32) {
    %c0_i32 = arith.constant 0 : i32
    %c0_i32_0 = arith.constant 0 : i32
    %c0_i32_1 = arith.constant 0 : i32
    return %c0_i32, %c0_i32_0 : i32, i32
  }
  func.func @transform_2(%arg0: i32) -> (i32, i32) {
    %c0_i32 = arith.constant 0 : i32
    %c0_i32_0 = arith.constant 0 : i32
    %c0_i32_1 = arith.constant 0 : i32
    return %c0_i32, %c0_i32_0 : i32, i32
  }
}

</mosaic_0001>

<bundles_post_ra>
// kernel: encoder_rnn_forward.2
= control target key start
LH: loop header
LB: loop body
LE: loop exit
PB: predicated region body
PF: predicated region fallthrough
CT: control target
= control target key end

     0   :  { %vm40_vm0 = vcmask 130048   ;;  %s536_s1 = inlined_call_operand.vmem [shape: f32[16,512], index: 1, kind: input, shape index: {}]   ;;  %s537_s0 = inlined_call_operand.vmem [shape: f32[64,16], index: 0, kind: input, shape index: {}]   ;;  %s538_s2 = inlined_call_operand.vmem [shape: f32[1,512], index: 2, kind: input, shape index: {}]   ;;  %s539_s3 = inlined_call_operand.vmem [shape: f32[64,512], index: 3, kind: output, shape index: {}]  }
   0x1   :  { %v28_v0 = vld [vmem:[%s536_s1 + $0x30] sm:$0xff]  ;;  %v29_v1 = vld [vmem:[%s536_s1 + $0x38] sm:$0xff]  ;;  %v14_v4 = vld [vmem:[%s537_s0] sm:$0xff] }
   0x2   :  { %v24_v2 = vld [vmem:[%s536_s1 + $0x10] sm:$0xff]  ;;  %161 = vmatpush.msra.mxu2 %v28_v0  ;;  %202 = vmatpush.msra.mxu3 %v29_v1  ;;  %v25_v3 = vld [vmem:[%s536_s1 + $0x18] sm:$0xff]  ;;  %v26_v5 = vld [vmem:[%s536_s1 + $0x20] sm:$0xff] }
   0x3   :  { %79 = vmatpush.msra.mxu0 %v26_v5  ;;  %v27_v6 = vld [vmem:[%s536_s1 + $0x28] sm:$0xff]  ;;  %v22_v7 = vld [vmem:[%s536_s1] sm:$0xff]  ;;  %v16_v10 = vld [vmem:[%s537_s0 + $0x10] sm:$0xff] }
   0x4   :  { %162 = vmatpush.msra.mxu2 %v24_v2  ;;  %203 = vmatpush.msra.mxu3 %v25_v3  ;;  %v23_v8 = vld [vmem:[%s536_s1 + $0x8] sm:$0xff]  ;;  %v17_v11 = vld [vmem:[%s537_s0 + $0x18] sm:$0xff]  ;;  %v18_v12 = vld [vmem:[%s537_s0 + $0x20] sm:$0xff] }
   0x5   :  { %281 = vmatmul.msk.f32.vlgmr.msra.gmra.mxu2 %vm40_vm0, %v14_v4  ;;  %289 = vmatmul.msk.f32.vlgmr.msra.gmra.mxu3 %vm40_vm0, %v14_v4  ;;  %v15_v9 = vld [vmem:[%s537_s0 + $0x8] sm:$0xff]  ;;  %v20_v14 = vld [vmem:[%s537_s0 + $0x30] sm:$0xff]  ;;  %v21_v15 = vld [vmem:[%s537_s0 + $0x38] sm:$0xff] }
   0x6   :  { %120 = vmatpush.msra.mxu1 %v27_v6  ;;  %80 = vmatpush.msra.mxu0 %v22_v7  ;;  %v19_v13 = vld [vmem:[%s537_s0 + $0x28] sm:$0xff]  ;;  %v30_v16 = vld [vmem:[%s538_s2] sm:$0xf] }
   0x7   :  { %265 = vmatmul.msk.f32.vlgmr.msra.gmra.mxu0 %vm40_vm0, %v14_v4  ;;  %v400_v17 = vperm.slane %v30_v16, 0  ;;  %v402_v18 = vperm.slane %v30_v16, 1  ;;  %v405_v21 = vperm.slane %v30_v16, 2  ;;  %v407_v22 = vperm.slane %v30_v16, 3 }
   0x8   :  { %121 = vmatpush.msra.mxu1 %v23_v8 }
   0x9   :  { %273 = vmatmul.msk.f32.vlgmr.msra.gmra.mxu1 %vm40_vm0, %v14_v4 }
   0xd   :  { %282 = vmatmul.msk.f32.gmra.mxu2 %vm40_vm0, %v15_v9  ;;  %290 = vmatmul.msk.f32.gmra.mxu3 %vm40_vm0, %v15_v9 }
   0xf   :  { %266 = vmatmul.msk.f32.gmra.mxu0 %vm40_vm0, %v15_v9 }
  0x11   :  { %274 = vmatmul.msk.f32.gmra.mxu1 %vm40_vm0, %v15_v9 }
  0x15   :  { %283 = vmatmul.msk.f32.gmra.mxu2 %vm40_vm0, %v16_v10  ;;  %291 = vmatmul.msk.f32.gmra.mxu3 %vm40_vm0, %v16_v10 }
  0x17   :  { %267 = vmatmul.msk.f32.gmra.mxu0 %vm40_vm0, %v16_v10 }
  0x19   :  { %275 = vmatmul.msk.f32.gmra.mxu1 %vm40_vm0, %v16_v10 }
  0x1d   :  { %284 = vmatmul.msk.f32.gmra.mxu2 %vm40_vm0, %v17_v11  ;;  %292 = vmatmul.msk.f32.gmra.mxu3 %vm40_vm0, %v17_v11 }
  0x1f   :  { %268 = vmatmul.msk.f32.gmra.mxu0 %vm40_vm0, %v17_v11 }
  0x21   :  { %276 = vmatmul.msk.f32.gmra.mxu1 %vm40_vm0, %v17_v11 }
  0x25   :  { %285 = vmatmul.msk.f32.gmra.mxu2 %vm40_vm0, %v18_v12  ;;  %293 = vmatmul.msk.f32.gmra.mxu3 %vm40_vm0, %v18_v12 }
  0x27   :  { %269 = vmatmul.msk.f32.gmra.mxu0 %vm40_vm0, %v18_v12 }
  0x29   :  { %277 = vmatmul.msk.f32.gmra.mxu1 %vm40_vm0, %v18_v12 }
  0x2d   :  { %286 = vmatmul.msk.f32.gmra.mxu2 %vm40_vm0, %v19_v13  ;;  %294 = vmatmul.msk.f32.gmra.mxu3 %vm40_vm0, %v19_v13 }
  0x2f   :  { %270 = vmatmul.msk.f32.gmra.mxu0 %vm40_vm0, %v19_v13 }
  0x31   :  { %278 = vmatmul.msk.f32.gmra.mxu1 %vm40_vm0, %v19_v13 }
  0x35   :  { %287 = vmatmul.msk.f32.gmra.mxu2 %vm40_vm0, %v20_v14  ;;  %295 = vmatmul.msk.f32.gmra.mxu3 %vm40_vm0, %v20_v14 }
  0x37   :  { %271 = vmatmul.msk.f32.gmra.mxu0 %vm40_vm0, %v20_v14 }
  0x39   :  { %279 = vmatmul.msk.f32.gmra.mxu1 %vm40_vm0, %v20_v14 }
  0x3d   :  { %288 = vmatmul.msk.f32.gmra.mxu2 %vm40_vm0, %v21_v15  ;;  %296 = vmatmul.msk.f32.gmra.mxu3 %vm40_vm0, %v21_v15 }
  0x3f   :  { %272 = vmatmul.msk.f32.gmra.mxu0 %vm40_vm0, %v21_v15 }
  0x41   :  { %280 = vmatmul.msk.f32.gmra.mxu1 %vm40_vm0, %v21_v15 }
  0x84   :  { %v82_v19 = vpop.f32.mrf.mxu0 }
  0x85   :  { %v83_v20 = vadd.f32 %v82_v19, %v400_v17 }
  0x86   :  { %v123_v23 = vpop.f32.mrf.mxu1 }
  0x87   :  { %229 = vst [vmem:[%s539_s3] sm:$0xff] %v83_v20  ;;  %v124_v24 = vadd.f32 %v123_v23, %v402_v18 }
  0x88   :  { %v164_v25 = vpop.f32.mrf.mxu2  ;;  %v205_v26 = vpop.f32.mrf.mxu3 }
  0x89   :  { %230 = vst [vmem:[%s539_s3 + $0x8] sm:$0xff] %v124_v24  ;;  %v165_v27 = vadd.f32 %v164_v25, %v405_v21  ;;  %v206_v28 = vadd.f32 %v205_v26, %v407_v22 }
  0x8b   :  { %231 = vst [vmem:[%s539_s3 + $0x10] sm:$0xff] %v165_v27 }
  0x8c   :  { %232 = vst [vmem:[%s539_s3 + $0x18] sm:$0xff] %v206_v28  ;;  %v85_v29 = vpop.f32.mrf.mxu0 }
  0x8d   :  { %v86_v30 = vadd.f32 %v85_v29, %v400_v17 }
  0x8e   :  { %v126_v31 = vpop.f32.mrf.mxu1 }
  0x8f   :  { %233 = vst [vmem:[%s539_s3 + $0x20] sm:$0xff] %v86_v30  ;;  %v127_v32 = vadd.f32 %v126_v31, %v402_v18 }
  0x90   :  { %v167_v33 = vpop.f32.mrf.mxu2  ;;  %v208_v34 = vpop.f32.mrf.mxu3 }
  0x91   :  { %234 = vst [vmem:[%s539_s3 + $0x28] sm:$0xff] %v127_v32  ;;  %v168_v35 = vadd.f32 %v167_v33, %v405_v21  ;;  %v209_v36 = vadd.f32 %v208_v34, %v407_v22 }
  0x93   :  { %235 = vst [vmem:[%s539_s3 + $0x30] sm:$0xff] %v168_v35 }
  0x94   :  { %236 = vst [vmem:[%s539_s3 + $0x38] sm:$0xff] %v209_v36  ;;  %v88_v37 = vpop.f32.mrf.mxu0 }
  0x95   :  { %v89_v38 = vadd.f32 %v88_v37, %v400_v17 }
  0x96   :  { %v129_v39 = vpop.f32.mrf.mxu1 }
  0x97   :  { %237 = vst [vmem:[%s539_s3 + $0x40] sm:$0xff] %v89_v38  ;;  %v130_v40 = vadd.f32 %v129_v39, %v402_v18 }
  0x98   :  { %v170_v41 = vpop.f32.mrf.mxu2  ;;  %v211_v42 = vpop.f32.mrf.mxu3 }
  0x99   :  { %238 = vst [vmem:[%s539_s3 + $0x48] sm:$0xff] %v130_v40  ;;  %v171_v43 = vadd.f32 %v170_v41, %v405_v21  ;;  %v212_v44 = vadd.f32 %v211_v42, %v407_v22 }
  0x9b   :  { %239 = vst [vmem:[%s539_s3 + $0x50] sm:$0xff] %v171_v43 }
  0x9c   :  { %240 = vst [vmem:[%s539_s3 + $0x58] sm:$0xff] %v212_v44  ;;  %v91_v45 = vpop.f32.mrf.mxu0 }
  0x9d   :  { %v92_v46 = vadd.f32 %v91_v45, %v400_v17 }
  0x9e   :  { %v132_v47 = vpop.f32.mrf.mxu1 }
  0x9f   :  { %241 = vst [vmem:[%s539_s3 + $0x60] sm:$0xff] %v92_v46  ;;  %v133_v48 = vadd.f32 %v132_v47, %v402_v18 }
  0xa0   :  { %v173_v49 = vpop.f32.mrf.mxu2  ;;  %v214_v50 = vpop.f32.mrf.mxu3 }
  0xa1   :  { %242 = vst [vmem:[%s539_s3 + $0x68] sm:$0xff] %v133_v48  ;;  %v174_v51 = vadd.f32 %v173_v49, %v405_v21  ;;  %v215_v52 = vadd.f32 %v214_v50, %v407_v22 }
  0xa3   :  { %243 = vst [vmem:[%s539_s3 + $0x70] sm:$0xff] %v174_v51 }
  0xa4   :  { %244 = vst [vmem:[%s539_s3 + $0x78] sm:$0xff] %v215_v52  ;;  %v94_v53 = vpop.f32.mrf.mxu0 }
  0xa5   :  { %v95_v54 = vadd.f32 %v94_v53, %v400_v17 }
  0xa6   :  { %v135_v55 = vpop.f32.mrf.mxu1 }
  0xa7   :  { %245 = vst [vmem:[%s539_s3 + $0x80] sm:$0xff] %v95_v54  ;;  %v136_v56 = vadd.f32 %v135_v55, %v402_v18 }
  0xa8   :  { %v176_v57 = vpop.f32.mrf.mxu2  ;;  %v217_v58 = vpop.f32.mrf.mxu3 }
  0xa9   :  { %246 = vst [vmem:[%s539_s3 + $0x88] sm:$0xff] %v136_v56  ;;  %v177_v59 = vadd.f32 %v176_v57, %v405_v21  ;;  %v218_v60 = vadd.f32 %v217_v58, %v407_v22 }
  0xab   :  { %247 = vst [vmem:[%s539_s3 + $0x90] sm:$0xff] %v177_v59 }
  0xac   :  { %248 = vst [vmem:[%s539_s3 + $0x98] sm:$0xff] %v218_v60  ;;  %v97_v61 = vpop.f32.mrf.mxu0 }
  0xad   :  { %v98_v62 = vadd.f32 %v97_v61, %v400_v17 }
  0xae   :  { %v138_v63 = vpop.f32.mrf.mxu1 }
  0xaf   :  { %249 = vst [vmem:[%s539_s3 + $0xa0] sm:$0xff] %v98_v62  ;;  %v139_v0 = vadd.f32 %v138_v63, %v402_v18 }
  0xb0   :  { %v179_v1 = vpop.f32.mrf.mxu2  ;;  %v220_v2 = vpop.f32.mrf.mxu3 }
  0xb1   :  { %250 = vst [vmem:[%s539_s3 + $0xa8] sm:$0xff] %v139_v0  ;;  %v180_v3 = vadd.f32 %v179_v1, %v405_v21  ;;  %v221_v4 = vadd.f32 %v220_v2, %v407_v22 }
  0xb3   :  { %251 = vst [vmem:[%s539_s3 + $0xb0] sm:$0xff] %v180_v3 }
  0xb4   :  { %252 = vst [vmem:[%s539_s3 + $0xb8] sm:$0xff] %v221_v4  ;;  %v100_v5 = vpop.f32.mrf.mxu0 }
  0xb5   :  { %v101_v6 = vadd.f32 %v100_v5, %v400_v17 }
  0xb6   :  { %v141_v7 = vpop.f32.mrf.mxu1 }
  0xb7   :  { %253 = vst [vmem:[%s539_s3 + $0xc0] sm:$0xff] %v101_v6  ;;  %v142_v8 = vadd.f32 %v141_v7, %v402_v18 }
  0xb8   :  { %v182_v9 = vpop.f32.mrf.mxu2  ;;  %v223_v10 = vpop.f32.mrf.mxu3 }
  0xb9   :  { %254 = vst [vmem:[%s539_s3 + $0xc8] sm:$0xff] %v142_v8  ;;  %v183_v11 = vadd.f32 %v182_v9, %v405_v21  ;;  %v224_v12 = vadd.f32 %v223_v10, %v407_v22 }
  0xbb   :  { %255 = vst [vmem:[%s539_s3 + $0xd0] sm:$0xff] %v183_v11 }
  0xbc   :  { %256 = vst [vmem:[%s539_s3 + $0xd8] sm:$0xff] %v224_v12  ;;  %v103_v13 = vpop.f32.mrf.mxu0 }
  0xbd   :  { %v104_v14 = vadd.f32 %v103_v13, %v400_v17 }
  0xbe   :  { %v144_v15 = vpop.f32.mrf.mxu1 }
  0xbf   :  { %257 = vst [vmem:[%s539_s3 + $0xe0] sm:$0xff] %v104_v14  ;;  %v145_v16 = vadd.f32 %v144_v15, %v402_v18 }
  0xc0   :  { %v185_v19 = vpop.f32.mrf.mxu2  ;;  %v226_v20 = vpop.f32.mrf.mxu3 }
  0xc1   :  { %258 = vst [vmem:[%s539_s3 + $0xe8] sm:$0xff] %v145_v16  ;;  %v186_v23 = vadd.f32 %v185_v19, %v405_v21  ;;  %v227_v24 = vadd.f32 %v226_v20, %v407_v22 }
  0xc3   :  { %259 = vst [vmem:[%s539_s3 + $0xf0] sm:$0xff] %v186_v23 }
  0xc4   :  { %260 = vst [vmem:[%s539_s3 + $0xf8] sm:$0xff] %v227_v24 }

// kernel: encoder_rnn_forward.3
= control target key start
LH: loop header
LB: loop body
LE: loop exit
PB: predicated region body
PF: predicated region fallthrough
CT: control target
= control target key end

     0   :  { %7 = vsyncpa [#allocation5], 0  ;;  %s1655_s12 = smov [#allocation4]   ;;  %s1656_s14 = smov 512   ;;  %s2572_s0 = inlined_call_operand.vmem [shape: f32[8,8,512], index: 0, kind: input, shape index: {}]   ;;  %s2573_s1 = inlined_call_operand.hbm [shape: f32[128,512], index: 1, kind: input, shape index: {}]   ;;  %s2574_s2 = inlined_call_operand.vmem [shape: f32[8,128], index: 2, kind: output, shape index: {}]  }
   0x1   :  { %s14_s11 = sshll.u32 %s2573_s1, 4  ;;  %s16_s13 = sshll.u32 %s1655_s12, 4  ;;  %s15_s11 = int_to_ptr.hbm [resolvable:$true] %s14_s11  ;;  %s17_s13 = int_to_ptr.vmem [resolvable:$true] %s16_s13 }
   0x2   :  { %s1657_s15 = smov 32  }
   0x3   :  { %22 = dma.hbm_to_vmem [thread:$0]  %s15_s11, 8192, %s17_s13, [#allocation5], %s1656_s14, %s1656_s14, %s1657_s15  }
   0x4   :  { %1653 = dma.done.wait [#allocation5], 8192  }
   0x5   :  { %1654 = vsyncadd [#allocation5], 4294959104  ;;  %v1677_v0 = vld [vmem:[#allocation4 + $0x1e0] sm:$0xff]  ;;  %v1679_v1 = vld [vmem:[#allocation4 + $0x1e8] sm:$0xff]  ;;  %v1658_v60 = vmov 0.0  }
   0x6   :  { %2681 = vst [vmem:[#allocation7_spill] sm:$0xff] %v1677_v0  ;;  %v1681_v2 = vld [vmem:[#allocation4 + $0x1f0] sm:$0xff]  ;;  %104 = vmatpush.msra.mxu0 %v1677_v0  ;;  %124 = vmatpush.msra.mxu1 %v1679_v1  ;;  %v1685_v3 = vld [vmem:[#allocation4 + $0x1c0] sm:$0xff]  ;;  %v1687_v4 = vld [vmem:[#allocation4 + $0x1c8] sm:$0xff] }
   0x7   :  { %v1689_v5 = vld [vmem:[#allocation4 + $0x1d0] sm:$0xff]  ;;  %144 = vmatpush.msra.mxu2 %v1681_v2  ;;  %v1692_v6 = vld [vmem:[#allocation4 + $0x1a0] sm:$0xff]  ;;  %v1694_v7 = vld [vmem:[#allocation4 + $0x1a8] sm:$0xff] }
   0x8   :  { %105 = vmatpush.msra.mxu0 %v1685_v3  ;;  %125 = vmatpush.msra.mxu1 %v1687_v4  ;;  %v1698_v8 = vld [vmem:[#allocation4 + $0x1b0] sm:$0xff]  ;;  %v1701_v9 = vld [vmem:[#allocation4 + $0x180] sm:$0xff]  ;;  %v1703_v10 = vld [vmem:[#allocation4 + $0x188] sm:$0xff] }
   0x9   :  { %145 = vmatpush.msra.mxu2 %v1689_v5  ;;  %v1707_v11 = vld [vmem:[#allocation4 + $0x190] sm:$0xff]  ;;  %v1710_v12 = vld [vmem:[#allocation4 + $0x160] sm:$0xff]  ;;  %v1712_v13 = vld [vmem:[#allocation4 + $0x168] sm:$0xff] }
   0xa   :  { %106 = vmatpush.msra.mxu0 %v1692_v6  ;;  %126 = vmatpush.msra.mxu1 %v1694_v7  ;;  %v1716_v14 = vld [vmem:[#allocation4 + $0x170] sm:$0xff]  ;;  %v1719_v15 = vld [vmem:[#allocation4 + $0x140] sm:$0xff]  ;;  %v1721_v16 = vld [vmem:[#allocation4 + $0x148] sm:$0xff] }
   0xb   :  { %146 = vmatpush.msra.mxu2 %v1698_v8  ;;  %v1723_v17 = vld [vmem:[#allocation4 + $0x1f8] sm:$0xff]  ;;  %v1727_v18 = vld [vmem:[#allocation4 + $0x150] sm:$0xff]  ;;  %v1732_v20 = vld [vmem:[#allocation4 + $0x120] sm:$0xff] }
   0xc   :  { %107 = vmatpush.msra.mxu0 %v1701_v9  ;;  %127 = vmatpush.msra.mxu1 %v1703_v10  ;;  %v1729_v19 = vld [vmem:[#allocation4 + $0x1d8] sm:$0xff]  ;;  %v1734_v21 = vld [vmem:[#allocation4 + $0x128] sm:$0xff]  ;;  %v1739_v22 = vld [vmem:[#allocation4 + $0x130] sm:$0xff] }
   0xd   :  { %147 = vmatpush.msra.mxu2 %v1707_v11  ;;  %164 = vmatpush.msra.mxu3 %v1723_v17  ;;  %v1741_v23 = vld [vmem:[#allocation4 + $0x1b8] sm:$0xff]  ;;  %v1744_v24 = vld [vmem:[#allocation4 + $0x100] sm:$0xff]  ;;  %v1746_v25 = vld [vmem:[#allocation4 + $0x108] sm:$0xff] }
   0xe   :  { %108 = vmatpush.msra.mxu0 %v1710_v12  ;;  %128 = vmatpush.msra.mxu1 %v1712_v13  ;;  %v1751_v26 = vld [vmem:[#allocation4 + $0x110] sm:$0xff]  ;;  %v1753_v27 = vld [vmem:[#allocation4 + $0x198] sm:$0xff]  ;;  %v1756_v28 = vld [vmem:[#allocation4 + $0xe0] sm:$0xff] }
   0xf   :  { %148 = vmatpush.msra.mxu2 %v1716_v14  ;;  %165 = vmatpush.msra.mxu3 %v1729_v19  ;;  %v1758_v29 = vld [vmem:[#allocation4 + $0xe8] sm:$0xff]  ;;  %v1763_v30 = vld [vmem:[#allocation4 + $0xf0] sm:$0xff]  ;;  %v1765_v31 = vld [vmem:[#allocation4 + $0x178] sm:$0xff] }
  0x10   :  { %109 = vmatpush.msra.mxu0 %v1719_v15  ;;  %129 = vmatpush.msra.mxu1 %v1721_v16  ;;  %v1768_v32 = vld [vmem:[#allocation4 + $0xc0] sm:$0xff]  ;;  %v1770_v33 = vld [vmem:[#allocation4 + $0xc8] sm:$0xff]  ;;  %v1775_v34 = vld [vmem:[#allocation4 + $0xd0] sm:$0xff] }
  0x11   :  { %149 = vmatpush.msra.mxu2 %v1727_v18  ;;  %166 = vmatpush.msra.mxu3 %v1741_v23  ;;  %2682 = vst [vmem:[#allocation8_spill] sm:$0xff] %v1775_v34  ;;  %v1777_v35 = vld [vmem:[#allocation4 + $0x158] sm:$0xff]  ;;  %v1780_v36 = vld [vmem:[#allocation4 + $0xa0] sm:$0xff]  ;;  %v1782_v37 = vld [vmem:[#allocation4 + $0xa8] sm:$0xff] }
  0x12   :  { %110 = vmatpush.msra.mxu0 %v1732_v20  ;;  %130 = vmatpush.msra.mxu1 %v1734_v21  ;;  %2683 = vst [vmem:[#allocation9_spill] sm:$0xff] %v1780_v36  ;;  %v1787_v38 = vld [vmem:[#allocation4 + $0xb0] sm:$0xff]  ;;  %v1789_v39 = vld [vmem:[#allocation4 + $0x138] sm:$0xff]  ;;  %v1792_v40 = vld [vmem:[#allocation4 + $0x80] sm:$0xff] }
  0x13   :  { %150 = vmatpush.msra.mxu2 %v1739_v22  ;;  %167 = vmatpush.msra.mxu3 %v1753_v27  ;;  %2684 = vst [vmem:[#allocation10_spill] sm:$0xff] %v1782_v37  ;;  %v1794_v41 = vld [vmem:[#allocation4 + $0x88] sm:$0xff]  ;;  %v1799_v42 = vld [vmem:[#allocation4 + $0x90] sm:$0xff]  ;;  %v1801_v43 = vld [vmem:[#allocation4 + $0x118] sm:$0xff] }
  0x14   :  { %111 = vmatpush.msra.mxu0 %v1744_v24  ;;  %131 = vmatpush.msra.mxu1 %v1746_v25  ;;  %2685 = vst [vmem:[#allocation11_spill] sm:$0xff] %v1787_v38  ;;  %v1804_v44 = vld [vmem:[#allocation4 + $0x60] sm:$0xff]  ;;  %v1806_v45 = vld [vmem:[#allocation4 + $0x68] sm:$0xff]  ;;  %v1811_v46 = vld [vmem:[#allocation4 + $0x70] sm:$0xff] }
  0x15   :  { %151 = vmatpush.msra.mxu2 %v1751_v26  ;;  %168 = vmatpush.msra.mxu3 %v1765_v31  ;;  %2686 = vst [vmem:[#allocation12_spill] sm:$0xff] %v1792_v40  ;;  %v1813_v47 = vld [vmem:[#allocation4 + $0xf8] sm:$0xff]  ;;  %v1816_v48 = vld [vmem:[#allocation4 + $0x40] sm:$0xff]  ;;  %v1818_v49 = vld [vmem:[#allocation4 + $0x48] sm:$0xff] }
  0x16   :  { %112 = vmatpush.msra.mxu0 %v1756_v28  ;;  %132 = vmatpush.msra.mxu1 %v1758_v29  ;;  %2687 = vst [vmem:[#allocation13_spill] sm:$0xff] %v1794_v41  ;;  %v1823_v50 = vld [vmem:[#allocation4 + $0x50] sm:$0xff]  ;;  %v1825_v51 = vld [vmem:[#allocation4 + $0xd8] sm:$0xff]  ;;  %v1828_v52 = vld [vmem:[#allocation4 + $0x20] sm:$0xff] }
  0x17   :  { %152 = vmatpush.msra.mxu2 %v1763_v30  ;;  %169 = vmatpush.msra.mxu3 %v1777_v35  ;;  %2688 = vst [vmem:[#allocation14_spill] sm:$0xff] %v1799_v42  ;;  %v1830_v53 = vld [vmem:[#allocation4 + $0x28] sm:$0xff]  ;;  %v1835_v54 = vld [vmem:[#allocation4 + $0x30] sm:$0xff]  ;;  %v1837_v55 = vld [vmem:[#allocation4 + $0xb8] sm:$0xff] }
  0x18   :  { %113 = vmatpush.msra.mxu0 %v1768_v32  ;;  %133 = vmatpush.msra.mxu1 %v1770_v33  ;;  %2689 = vst [vmem:[#allocation15_spill] sm:$0xff] %v1804_v44  ;;  %v1840_v56 = vld [vmem:[#allocation4] sm:$0xff]  ;;  %v1842_v57 = vld [vmem:[#allocation4 + $0x8] sm:$0xff]  ;;  %v1847_v58 = vld [vmem:[#allocation4 + $0x10] sm:$0xff] }
  0x19   :  { %153 = vmatpush.msra.mxu2 %v1775_v34  ;;  %2690 = vst [vmem:[#allocation16_spill] sm:$0xff] %v1806_v45  ;;  %170 = vmatpush.msra.mxu3 %v1789_v39  ;;  %v1853_v59 = vld [vmem:[#allocation4 + $0x98] sm:$0xff] }
  0x1a   :  { %114 = vmatpush.msra.mxu0 %v1780_v36  ;;  %134 = vmatpush.msra.mxu1 %v1782_v37  ;;  %2691 = vst [vmem:[#allocation17_spill] sm:$0xff] %v1811_v46  ;;  %v1856_v61 = vld [vmem:[#allocation4 + $0x78] sm:$0xff] }
  0x1b   :  { %154 = vmatpush.msra.mxu2 %v1787_v38  ;;  %2692 = vst [vmem:[#allocation18_spill] sm:$0xff] %v1816_v48  ;;  %171 = vmatpush.msra.mxu3 %v1801_v43  ;;  %v1860_v62 = vld [vmem:[#allocation4 + $0x58] sm:$0xff] }
  0x1c   :  { %115 = vmatpush.msra.mxu0 %v1792_v40  ;;  %135 = vmatpush.msra.mxu1 %v1794_v41  ;;  %2693 = vst [vmem:[#allocation19_spill] sm:$0xff] %v1818_v49  ;;  %v1866_v63 = vld [vmem:[#allocation4 + $0x38] sm:$0xff] }
  0x1d   :  { %155 = vmatpush.msra.mxu2 %v1799_v42  ;;  %2694 = vst [vmem:[#allocation20_spill] sm:$0xff] %v1823_v50  ;;  %172 = vmatpush.msra.mxu3 %v1813_v47 }
  0x1e   :  { %116 = vmatpush.msra.mxu0 %v1804_v44  ;;  %136 = vmatpush.msra.mxu1 %v1806_v45  ;;  %2695 = vst [vmem:[#allocation21_spill] sm:$0xff] %v1825_v51 }
  0x1f   :  { %156 = vmatpush.msra.mxu2 %v1811_v46  ;;  %2696 = vst [vmem:[#allocation22_spill] sm:$0xff] %v1828_v52  ;;  %173 = vmatpush.msra.mxu3 %v1825_v51 }
  0x20   :  { %2697 = vst [vmem:[#allocation23_spill] sm:$0xff] %v1830_v53  ;;  %117 = vmatpush.msra.mxu0 %v1816_v48  ;;  %137 = vmatpush.msra.mxu1 %v1818_v49 }
  0x21   :  { %2698 = vst [vmem:[#allocation24_spill] sm:$0xff] %v1835_v54  ;;  %157 = vmatpush.msra.mxu2 %v1823_v50  ;;  %174 = vmatpush.msra.mxu3 %v1837_v55 }
  0x22   :  { %2699 = vst [vmem:[#allocation25_spill] sm:$0xff] %v1837_v55  ;;  %118 = vmatpush.msra.mxu0 %v1828_v52  ;;  %138 = vmatpush.msra.mxu1 %v1830_v53 }
  0x23   :  { %2700 = vst [vmem:[#allocation26_spill] sm:$0xff] %v1840_v56  ;;  %158 = vmatpush.msra.mxu2 %v1835_v54  ;;  %175 = vmatpush.msra.mxu3 %v1853_v59 }
  0x24   :  { %2701 = vst [vmem:[#allocation27_spill] sm:$0xff] %v1842_v57  ;;  %119 = vmatpush.msra.mxu0 %v1840_v56  ;;  %139 = vmatpush.msra.mxu1 %v1842_v57 }
  0x25   :  { %2702 = vst [vmem:[#allocation28_spill] sm:$0xff] %v1847_v58  ;;  %159 = vmatpush.msra.mxu2 %v1847_v58  ;;  %120 = vmatmul.f32.vlgmr.msra.gmra.mxu0 %v1658_v60 }
  0x26   :  { %2703 = vst [vmem:[#allocation29_spill] sm:$0xff] %v1853_v59  ;;  %140 = vmatmul.f32.vlgmr.msra.gmra.mxu1 %v1658_v60  ;;  %160 = vmatmul.f32.vlgmr.msra.gmra.mxu2 %v1658_v60 }
  0x27   :  { %2704 = vst [vmem:[#allocation30_spill] sm:$0xff] %v1856_v61  ;;  %262 = vmatpush.msrb.mxu0 %v1677_v0  ;;  %282 = vmatpush.msrb.mxu1 %v1679_v1  ;;  %v1872_v0 = vld [vmem:[#allocation4 + $0x18] sm:$0xff] }
  0x28   :  { %2705 = vst [vmem:[#allocation31_spill] sm:$0xff] %v1860_v62  ;;  %302 = vmatpush.msrb.mxu2 %v1681_v2  ;;  %176 = vmatpush.msra.mxu3 %v1856_v61 }
  0x29   :  { %263 = vmatpush.msrb.mxu0 %v1685_v3  ;;  %2706 = vst [vmem:[#allocation32_spill] sm:$0xff] %v1866_v63  ;;  %283 = vmatpush.msrb.mxu1 %v1687_v4 }
  0x2a   :  { %303 = vmatpush.msrb.mxu2 %v1689_v5  ;;  %177 = vmatpush.msra.mxu3 %v1860_v62  ;;  %2707 = vst [vmem:[#allocation33_spill] sm:$0xff] %v1872_v0 }
  0x2b   :  { %264 = vmatpush.msrb.mxu0 %v1692_v6  ;;  %284 = vmatpush.msrb.mxu1 %v1694_v7 }
  0x2c   :  { %304 = vmatpush.msrb.mxu2 %v1698_v8  ;;  %178 = vmatpush.msra.mxu3 %v1866_v63 }
  0x2d   :  { %265 = vmatpush.msrb.mxu0 %v1701_v9  ;;  %285 = vmatpush.msrb.mxu1 %v1703_v10 }
  0x2e   :  { %305 = vmatpush.msrb.mxu2 %v1707_v11  ;;  %179 = vmatpush.msra.mxu3 %v1872_v0 }
  0x2f   :  { %266 = vmatpush.msrb.mxu0 %v1710_v12  ;;  %180 = vmatmul.f32.vlgmr.msra.gmra.mxu3 %v1658_v60  ;;  %v2708_v60 = vld [vmem:[#allocation7_spill] sm:$0xff] }
  0x30   :  { %286 = vmatpush.msrb.mxu1 %v1712_v13  ;;  %322 = vmatpush.msrb.mxu3 %v1723_v17 }
  0x31   :  { %306 = vmatpush.msrb.mxu2 %v1716_v14  ;;  %267 = vmatpush.msrb.mxu0 %v1719_v15 }
  0x32   :  { %287 = vmatpush.msrb.mxu1 %v1721_v16  ;;  %323 = vmatpush.msrb.mxu3 %v1729_v19 }
  0x33   :  { %307 = vmatpush.msrb.mxu2 %v1727_v18  ;;  %268 = vmatpush.msrb.mxu0 %v1732_v20 }
  0x34   :  { %288 = vmatpush.msrb.mxu1 %v1734_v21  ;;  %324 = vmatpush.msrb.mxu3 %v1741_v23 }
  0x35   :  { %308 = vmatpush.msrb.mxu2 %v1739_v22  ;;  %269 = vmatpush.msrb.mxu0 %v1744_v24 }
  0x36   :  { %289 = vmatpush.msrb.mxu1 %v1746_v25  ;;  %325 = vmatpush.msrb.mxu3 %v1753_v27 }
  0x37   :  { %309 = vmatpush.msrb.mxu2 %v1751_v26  ;;  %270 = vmatpush.msrb.mxu0 %v1756_v28 }
  0x38   :  { %290 = vmatpush.msrb.mxu1 %v1758_v29  ;;  %326 = vmatpush.msrb.mxu3 %v1765_v31 }
  0x39   :  { %310 = vmatpush.msrb.mxu2 %v1763_v30  ;;  %271 = vmatpush.msrb.mxu0 %v1768_v32 }
  0x3a   :  { %291 = vmatpush.msrb.mxu1 %v1770_v33  ;;  %327 = vmatpush.msrb.mxu3 %v1777_v35 }
  0x3b   :  { %311 = vmatpush.msrb.mxu2 %v1775_v34  ;;  %272 = vmatpush.msrb.mxu0 %v1780_v36 }
  0x3c   :  { %292 = vmatpush.msrb.mxu1 %v1782_v37  ;;  %328 = vmatpush.msrb.mxu3 %v1789_v39 }
  0x3d   :  { %312 = vmatpush.msrb.mxu2 %v1787_v38  ;;  %273 = vmatpush.msrb.mxu0 %v1792_v40 }
  0x3e   :  { %293 = vmatpush.msrb.mxu1 %v1794_v41  ;;  %329 = vmatpush.msrb.mxu3 %v1801_v43 }
  0x3f   :  { %313 = vmatpush.msrb.mxu2 %v1799_v42  ;;  %274 = vmatpush.msrb.mxu0 %v1804_v44 }
  0x40   :  { %294 = vmatpush.msrb.mxu1 %v1806_v45  ;;  %330 = vmatpush.msrb.mxu3 %v1813_v47 }
  0x41   :  { %314 = vmatpush.msrb.mxu2 %v1811_v46  ;;  %275 = vmatpush.msrb.mxu0 %v1816_v48 }
  0x42   :  { %295 = vmatpush.msrb.mxu1 %v1818_v49  ;;  %331 = vmatpush.msrb.mxu3 %v1825_v51 }
  0x43   :  { %315 = vmatpush.msrb.mxu2 %v1823_v50  ;;  %276 = vmatpush.msrb.mxu0 %v1828_v52 }
  0x44   :  { %296 = vmatpush.msrb.mxu1 %v1830_v53  ;;  %332 = vmatpush.msrb.mxu3 %v1837_v55 }
  0x45   :  { %316 = vmatpush.msrb.mxu2 %v1835_v54  ;;  %277 = vmatpush.msrb.mxu0 %v1840_v56 }
  0x46   :  { %297 = vmatpush.msrb.mxu1 %v1842_v57  ;;  %333 = vmatpush.msrb.mxu3 %v1853_v59 }
  0x47   :  { %317 = vmatpush.msrb.mxu2 %v1847_v58  ;;  %421 = vmatpush.msra.mxu0 %v2708_v60 }
  0x48   :  { %441 = vmatpush.msra.mxu1 %v1679_v1  ;;  %334 = vmatpush.msrb.mxu3 %v1856_v61 }
  0x49   :  { %461 = vmatpush.msra.mxu2 %v1681_v2  ;;  %422 = vmatpush.msra.mxu0 %v1685_v3 }
  0x4a   :  { %442 = vmatpush.msra.mxu1 %v1687_v4  ;;  %335 = vmatpush.msrb.mxu3 %v1860_v62 }
  0x4b   :  { %462 = vmatpush.msra.mxu2 %v1689_v5  ;;  %423 = vmatpush.msra.mxu0 %v1692_v6 }
  0x4c   :  { %443 = vmatpush.msra.mxu1 %v1694_v7  ;;  %336 = vmatpush.msrb.mxu3 %v1866_v63 }
  0x4d   :  { %463 = vmatpush.msra.mxu2 %v1698_v8  ;;  %424 = vmatpush.msra.mxu0 %v1701_v9 }
  0x4e   :  { %444 = vmatpush.msra.mxu1 %v1703_v10  ;;  %337 = vmatpush.msrb.mxu3 %v1872_v0 }
  0x4f   :  { %464 = vmatpush.msra.mxu2 %v1707_v11  ;;  %425 = vmatpush.msra.mxu0 %v1710_v12 }
  0x50   :  { %481 = vmatpush.msra.mxu3 %v1723_v17  ;;  %445 = vmatpush.msra.mxu1 %v1712_v13 }
  0x51   :  { %465 = vmatpush.msra.mxu2 %v1716_v14  ;;  %426 = vmatpush.msra.mxu0 %v1719_v15 }
  0x52   :  { %482 = vmatpush.msra.mxu3 %v1729_v19  ;;  %446 = vmatpush.msra.mxu1 %v1721_v16 }
  0x53   :  { %466 = vmatpush.msra.mxu2 %v1727_v18  ;;  %427 = vmatpush.msra.mxu0 %v1732_v20 }
  0x54   :  { %483 = vmatpush.msra.mxu3 %v1741_v23  ;;  %447 = vmatpush.msra.mxu1 %v1734_v21 }
  0x55   :  { %467 = vmatpush.msra.mxu2 %v1739_v22  ;;  %428 = vmatpush.msra.mxu0 %v1744_v24 }
  0x56   :  { %484 = vmatpush.msra.mxu3 %v1753_v27  ;;  %448 = vmatpush.msra.mxu1 %v1746_v25 }
  0x57   :  { %468 = vmatpush.msra.mxu2 %v1751_v26  ;;  %429 = vmatpush.msra.mxu0 %v1756_v28 }
  0x58   :  { %485 = vmatpush.msra.mxu3 %v1765_v31  ;;  %449 = vmatpush.msra.mxu1 %v1758_v29 }
  0x59   :  { %469 = vmatpush.msra.mxu2 %v1763_v30  ;;  %430 = vmatpush.msra.mxu0 %v1768_v32 }
  0x5a   :  { %486 = vmatpush.msra.mxu3 %v1777_v35  ;;  %450 = vmatpush.msra.mxu1 %v1770_v33 }
  0x5b   :  { %470 = vmatpush.msra.mxu2 %v1775_v34  ;;  %431 = vmatpush.msra.mxu0 %v1780_v36 }
  0x5c   :  { %487 = vmatpush.msra.mxu3 %v1789_v39  ;;  %451 = vmatpush.msra.mxu1 %v1782_v37 }
  0x5d   :  { %471 = vmatpush.msra.mxu2 %v1787_v38  ;;  %432 = vmatpush.msra.mxu0 %v1792_v40 }
  0x5e   :  { %488 = vmatpush.msra.mxu3 %v1801_v43  ;;  %452 = vmatpush.msra.mxu1 %v1794_v41 }
  0x5f   :  { %472 = vmatpush.msra.mxu2 %v1799_v42  ;;  %433 = vmatpush.msra.mxu0 %v1804_v44 }
  0x60   :  { %489 = vmatpush.msra.mxu3 %v1813_v47  ;;  %453 = vmatpush.msra.mxu1 %v1806_v45 }
  0x61   :  { %473 = vmatpush.msra.mxu2 %v1811_v46  ;;  %434 = vmatpush.msra.mxu0 %v1816_v48 }
  0x62   :  { %490 = vmatpush.msra.mxu3 %v1825_v51  ;;  %454 = vmatpush.msra.mxu1 %v1818_v49 }
  0x63   :  { %474 = vmatpush.msra.mxu2 %v1823_v50  ;;  %435 = vmatpush.msra.mxu0 %v1828_v52 }
  0x64   :  { %491 = vmatpush.msra.mxu3 %v1837_v55  ;;  %455 = vmatpush.msra.mxu1 %v1830_v53 }
  0x65   :  { %475 = vmatpush.msra.mxu2 %v1835_v54  ;;  %436 = vmatpush.msra.mxu0 %v1840_v56  ;;  %v100_v54 = vld [vmem:[%s2572_s0] sm:$0xff]  ;;  %v101_v56 = vld [vmem:[%s2572_s0 + $0x8] sm:$0xff] }
  0x66   :  { %492 = vmatpush.msra.mxu3 %v1853_v59  ;;  %456 = vmatpush.msra.mxu1 %v1842_v57 }
  0x67   :  { %476 = vmatpush.msra.mxu2 %v1847_v58 }
  0x68   :  { %493 = vmatpush.msra.mxu3 %v1856_v61 }
  0x6a   :  { %494 = vmatpush.msra.mxu3 %v1860_v62 }
  0x6c   :  { %495 = vmatpush.msra.mxu3 %v1866_v63  ;;  %v102_v63 = vld [vmem:[%s2572_s0 + $0x10] sm:$0xff] }
  0x6e   :  { %496 = vmatpush.msra.mxu3 %v1872_v0 }
  0xa2   :  { %v121_v53 = vpop.f32.mrf.mxu0 }
  0xa3   :  { %v184_v57 = vadd.f32 %v121_v53, %v100_v54  ;;  %v141_v52 = vpop.f32.mrf.mxu1 }
  0xa4   :  { %v185_v58 = vadd.f32 %v141_v52, %v101_v56  ;;  %v103_v52 = vld [vmem:[%s2572_s0 + $0x18] sm:$0xff] }
  0xa5   :  { %v1381_v50 = vmul.f32 -1.442695, %v184_v57 }
  0xa6   :  { %v1382_v49 = vmul.f32 -1.442695, %v185_v58 }
  0xa7   :  { %1437 = vpow2.f32 %v1381_v50 }
  0xa8   :  { %1439 = vpow2.f32 %v1382_v49 }
  0xa9   :  { %v161_v0 = vpop.f32.mrf.mxu2 }
  0xaa   :  { %v186_v62 = vadd.f32 %v161_v0, %v102_v63 }
  0xac   :  { %v1383_v48 = vmul.f32 -1.442695, %v186_v62 }
  0xad   :  { %v1438_v61 = vpop.eup %1437 }
  0xae   :  { %v1440_v46 = vpop.eup %1439  ;;  %v197_v45 = vadd.f32 1.0, %v1438_v61  ;;  %1441 = vpow2.f32 %v1383_v48 }
  0xaf   :  { %v198_v44 = vadd.f32 1.0, %v1440_v46 }
  0xb0   :  { %1443 = vrcp.f32 %v197_v45  ;;  %v211_v48 = vand.u32 2147483648, %v197_v45  ;;  %v209_v59 = vand.u32 2147483647, %v197_v45  ;;  %vm205_vm2 = vweird.f32 %v197_v45 }
  0xb1   :  { %1445 = vrcp.f32 %v198_v44  ;;  %v226_v46 = vand.u32 2147483648, %v198_v44  ;;  %v224_v41 = vand.u32 2147483647, %v198_v44  ;;  %vm220_vm3 = vweird.f32 %v198_v44 }
  0xb2   :  { %v181_v50 = vpop.f32.mrf.mxu3  ;;  %vm210_vm5 = vcmp.eq.f32.partialorder %v209_v59, 8.507059e+37 }
  0xb3   :  { %v187_v54 = vadd.f32 %v181_v50, %v103_v52  ;;  %vm225_vm7 = vcmp.eq.f32.partialorder %v224_v41, 8.507059e+37 }
  0xb4   :  { %v1442_v53 = vpop.eup %1441 }
  0xb5   :  { %v199_v56 = vadd.f32 1.0, %v1442_v53  ;;  %v212_v53 = vor.u32 1.1754944e-38, %v211_v48  ;;  %v2716_v48 = vld [vmem:[#allocation13_spill] sm:$0xff] }
  0xb6   :  { %v1444_v57 = vpop.eup %1443 }
  0xb7   :  { %v1446_v49 = vpop.eup %1445  ;;  %v201_v58 = vmul.f32 %v1444_v57, %v197_v45  ;;  %1447 = vrcp.f32 %v199_v56  ;;  %vm206_vm0 = vweird.f32 %v1444_v57  ;;  %vm235_vm9 = vweird.f32 %v199_v56 }
  0xb8   :  { %v216_v0 = vmul.f32 %v1446_v49, %v198_v44  ;;  %1449 = vtanh.f32 %v187_v54  ;;  %vm221_vm1 = vweird.f32 %v1446_v49  ;;  %vm207_vm4 = vmor %vm205_vm2, %vm206_vm0  ;;  %v227_v54 = vor.u32 1.1754944e-38, %v226_v46  ;;  %v2717_v46 = vld [vmem:[#allocation14_spill] sm:$0xff] }
  0xb9   :  { %v202_v62 = vsub.f32 1.0, %v201_v58  ;;  %vm222_vm6 = vmor %vm220_vm3, %vm221_vm1  ;;  %v241_v44 = vand.u32 2147483648, %v199_v56 }
  0xba   :  { %v217_v61 = vsub.f32 1.0, %v216_v0 }
  0xbb   :  { %v203_v63 = vmul.f32 %v1444_v57, %v202_v62  ;;  %v242_v59 = vor.u32 1.1754944e-38, %v241_v44  ;;  %v2727_v44 = vld [vmem:[#allocation22_spill] sm:$0xff] }
  0xbc   :  { %v218_v42 = vmul.f32 %v1446_v49, %v217_v61 }
  0xbd   :  { %v1448_v40 = vpop.eup %1447  ;;  %v204_v55 = vadd.f32 %v1444_v57, %v203_v63 }
  0xbe   :  { %v1450_v52 = vpop.eup %1449  ;;  %v231_v50 = vmul.f32 %v1448_v40, %v199_v56  ;;  %v219_v38 = vadd.f32 %v1446_v49, %v218_v42  ;;  %vm236_vm8 = vweird.f32 %v1448_v40  ;;  %v239_v42 = vand.u32 2147483647, %v199_v56  ;;  %v2714_v56 = vld [vmem:[#allocation25_spill] sm:$0xff] }
  0xbf   :  { %v208_v58 = vsel %vm207_vm4, %v1444_v57, %v204_v55  ;;  %vm237_vm10 = vmor %vm235_vm9, %vm236_vm8 }
  0xc0   :  { %v232_v0 = vsub.f32 1.0, %v231_v50  ;;  %v213_v62 = vsel %vm210_vm5, %v212_v53, %v208_v58  ;;  %v223_v37 = vsel %vm222_vm6, %v1446_v49, %v219_v38  ;;  %vm240_vm11 = vcmp.eq.f32.partialorder %v239_v42, 8.507059e+37  ;;  %v2715_v49 = vld [vmem:[#allocation12_spill] sm:$0xff]  ;;  %v2719_v50 = vld [vmem:[#allocation15_spill] sm:$0xff]  ;;  %v2722_v58 = vld [vmem:[#allocation30_spill] sm:$0xff] }
  0xc1   :  { %v228_v61 = vsel %vm225_vm7, %v227_v54, %v223_v37  ;;  %v247_v36 = vmul.f32 %v1450_v52, %v213_v62  ;;  %v2711_v37 = vld [vmem:[#allocation9_spill] sm:$0xff]  ;;  %v2720_v53 = vld [vmem:[#allocation16_spill] sm:$0xff]  ;;  %v2724_v62 = vld [vmem:[#allocation19_spill] sm:$0xff] }
  0xc2   :  { %v246_v51 = vmul.f32 0.0, %v228_v61  ;;  %v233_v34 = vmul.f32 %v1448_v40, %v232_v0  ;;  %v2718_v52 = vld [vmem:[#allocation29_spill] sm:$0xff]  ;;  %v2723_v0 = vld [vmem:[#allocation18_spill] sm:$0xff]  ;;  %v2725_v61 = vld [vmem:[#allocation20_spill] sm:$0xff] }
  0xc3   :  { %v2721_v54 = vld [vmem:[#allocation17_spill] sm:$0xff]  ;;  %v2728_v42 = vld [vmem:[#allocation23_spill] sm:$0xff] }
  0xc4   :  { %v2009_v63 = vadd.f32 %v247_v36, %v246_v51  ;;  %v234_v45 = vadd.f32 %v1448_v40, %v233_v34  ;;  %v2709_v34 = vld [vmem:[#allocation8_spill] sm:$0xff]  ;;  %v2710_v36 = vld [vmem:[#allocation21_spill] sm:$0xff]  ;;  %v2713_v51 = vld [vmem:[#allocation11_spill] sm:$0xff] }
  0xc6   :  { %1451 = vtanh.f32 %v2009_v63  ;;  %v238_v55 = vsel %vm237_vm10, %v1448_v40, %v234_v45  ;;  %v2712_v40 = vld [vmem:[#allocation10_spill] sm:$0xff]  ;;  %v2726_v45 = vld [vmem:[#allocation31_spill] sm:$0xff] }
  0xc7   :  { %v243_v38 = vsel %vm240_vm11, %v242_v59, %v238_v55  ;;  %v2729_v55 = vld [vmem:[#allocation24_spill] sm:$0xff] }
  0xc8   :  { %v2730_v59 = vld [vmem:[#allocation32_spill] sm:$0xff] }
  0xcc   :  { %v1452_v57 = vpop.eup %1451 }
  0xcd   :  { %v250_v41 = vmul.f32 %v1452_v57, %v243_v38  ;;  %v2731_v57 = vld [vmem:[#allocation26_spill] sm:$0xff]  ;;  %v2732_v38 = vld [vmem:[#allocation27_spill] sm:$0xff] }
  0xcf   :  { %278 = vmatmul.f32.vlgmr.msrb.gmra.mxu0 %v250_v41  ;;  %298 = vmatmul.f32.vlgmr.msrb.gmra.mxu1 %v250_v41 }
  0xd0   :  { %318 = vmatmul.f32.vlgmr.msrb.gmra.mxu2 %v250_v41  ;;  %338 = vmatmul.f32.vlgmr.msrb.gmra.mxu3 %v250_v41  ;;  %v2733_v41 = vld [vmem:[#allocation28_spill] sm:$0xff] }
  0xd1   :  { %580 = vmatpush.msrb.mxu0 %v2708_v60  ;;  %600 = vmatpush.msrb.mxu1 %v1679_v1 }
  0xd2   :  { %620 = vmatpush.msrb.mxu2 %v1681_v2  ;;  %640 = vmatpush.msrb.mxu3 %v1723_v17 }
  0xd3   :  { %581 = vmatpush.msrb.mxu0 %v1685_v3  ;;  %601 = vmatpush.msrb.mxu1 %v1687_v4 }
  0xd4   :  { %621 = vmatpush.msrb.mxu2 %v1689_v5  ;;  %641 = vmatpush.msrb.mxu3 %v1729_v19 }
  0xd5   :  { %582 = vmatpush.msrb.mxu0 %v1692_v6  ;;  %602 = vmatpush.msrb.mxu1 %v1694_v7 }
  0xd6   :  { %622 = vmatpush.msrb.mxu2 %v1698_v8  ;;  %642 = vmatpush.msrb.mxu3 %v1741_v23 }
  0xd7   :  { %583 = vmatpush.msrb.mxu0 %v1701_v9  ;;  %603 = vmatpush.msrb.mxu1 %v1703_v10 }
  0xd8   :  { %623 = vmatpush.msrb.mxu2 %v1707_v11  ;;  %643 = vmatpush.msrb.mxu3 %v1753_v27 }
  0xd9   :  { %584 = vmatpush.msrb.mxu0 %v1710_v12  ;;  %604 = vmatpush.msrb.mxu1 %v1712_v13 }
  0xda   :  { %624 = vmatpush.msrb.mxu2 %v1716_v14  ;;  %644 = vmatpush.msrb.mxu3 %v1765_v31 }
  0xdb   :  { %585 = vmatpush.msrb.mxu0 %v1719_v15  ;;  %605 = vmatpush.msrb.mxu1 %v1721_v16 }
  0xdc   :  { %625 = vmatpush.msrb.mxu2 %v1727_v18  ;;  %645 = vmatpush.msrb.mxu3 %v1777_v35 }
  0xdd   :  { %586 = vmatpush.msrb.mxu0 %v1732_v20  ;;  %606 = vmatpush.msrb.mxu1 %v1734_v21 }
  0xde   :  { %626 = vmatpush.msrb.mxu2 %v1739_v22  ;;  %646 = vmatpush.msrb.mxu3 %v1789_v39 }
  0xdf   :  { %587 = vmatpush.msrb.mxu0 %v1744_v24  ;;  %607 = vmatpush.msrb.mxu1 %v1746_v25 }
  0xe0   :  { %627 = vmatpush.msrb.mxu2 %v1751_v26  ;;  %647 = vmatpush.msrb.mxu3 %v1801_v43 }
  0xe1   :  { %588 = vmatpush.msrb.mxu0 %v1756_v28  ;;  %608 = vmatpush.msrb.mxu1 %v1758_v29 }
  0xe2   :  { %628 = vmatpush.msrb.mxu2 %v1763_v30  ;;  %648 = vmatpush.msrb.mxu3 %v1813_v47 }
  0xe3   :  { %589 = vmatpush.msrb.mxu0 %v1768_v32  ;;  %609 = vmatpush.msrb.mxu1 %v1770_v33 }
  0xe4   :  { %629 = vmatpush.msrb.mxu2 %v2709_v34  ;;  %649 = vmatpush.msrb.mxu3 %v2710_v36 }
  0xe5   :  { %590 = vmatpush.msrb.mxu0 %v2711_v37  ;;  %610 = vmatpush.msrb.mxu1 %v2712_v40 }
  0xe6   :  { %630 = vmatpush.msrb.mxu2 %v2713_v51  ;;  %650 = vmatpush.msrb.mxu3 %v2714_v56 }
  0xe7   :  { %591 = vmatpush.msrb.mxu0 %v2715_v49  ;;  %611 = vmatpush.msrb.mxu1 %v2716_v48 }
  0xe8   :  { %631 = vmatpush.msrb.mxu2 %v2717_v46  ;;  %651 = vmatpush.msrb.mxu3 %v2718_v52 }
  0xe9   :  { %592 = vmatpush.msrb.mxu0 %v2719_v50  ;;  %612 = vmatpush.msrb.mxu1 %v2720_v53 }
  0xea   :  { %632 = vmatpush.msrb.mxu2 %v2721_v54  ;;  %652 = vmatpush.msrb.mxu3 %v2722_v58 }
  0xeb   :  { %593 = vmatpush.msrb.mxu0 %v2723_v0  ;;  %613 = vmatpush.msrb.mxu1 %v2724_v62  ;;  %v2734_v0 = vld [vmem:[#allocation33_spill] sm:$0xff] }
  0xec   :  { %633 = vmatpush.msrb.mxu2 %v2725_v61  ;;  %653 = vmatpush.msrb.mxu3 %v2726_v45  ;;  %v1384_v45 = vld [vmem:[%s2572_s0 + $0x20] sm:$0xff] }
  0xed   :  { %594 = vmatpush.msrb.mxu0 %v2727_v44  ;;  %614 = vmatpush.msrb.mxu1 %v2728_v42  ;;  %v1385_v42 = vld [vmem:[%s2572_s0 + $0x28] sm:$0xff] }
  0xee   :  { %634 = vmatpush.msrb.mxu2 %v2729_v55  ;;  %654 = vmatpush.msrb.mxu3 %v2730_v59 }
  0xef   :  { %595 = vmatpush.msrb.mxu0 %v2731_v57  ;;  %615 = vmatpush.msrb.mxu1 %v2732_v38 }
  0xf0   :  { %635 = vmatpush.msrb.mxu2 %v2733_v41  ;;  %655 = vmatpush.msrb.mxu3 %v2734_v0  ;;  %v1386_v41 = vld [vmem:[%s2572_s0 + $0x30] sm:$0xff] }
 0x14c   :  { %v279_v44 = vpop.f32.mrf.mxu0  ;;  %v299_v55 = vpop.f32.mrf.mxu1 }
 0x14d   :  { %v342_v61 = vadd.f32 %v1384_v45, %v279_v44  ;;  %v343_v59 = vadd.f32 %v1385_v42, %v299_v55 }
 0x14f   :  { %v1388_v62 = vmul.f32 -1.442695, %v342_v61  ;;  %v1389_v57 = vmul.f32 -1.442695, %v343_v59  ;;  %v1387_v61 = vld [vmem:[%s2572_s0 + $0x38] sm:$0xff] }
 0x151   :  { %1453 = vpow2.f32 %v1388_v62 }
 0x152   :  { %1455 = vpow2.f32 %v1389_v57 }
 0x153   :  { %v319_v0 = vpop.f32.mrf.mxu2  ;;  %v339_v62 = vpop.f32.mrf.mxu3 }
 0x154   :  { %v344_v38 = vadd.f32 %v1386_v41, %v319_v0  ;;  %v345_v55 = vadd.f32 %v1387_v61, %v339_v62 }
 0x156   :  { %v1390_v58 = vmul.f32 -1.442695, %v344_v38 }
 0x157   :  { %v1454_v54 = vpop.eup %1453 }
 0x158   :  { %v1456_v53 = vpop.eup %1455  ;;  %v355_v50 = vadd.f32 1.0, %v1454_v54  ;;  %1457 = vpow2.f32 %v1390_v58 }
 0x159   :  { %v356_v52 = vadd.f32 1.0, %v1456_v53 }
 0x15a   :  { %1459 = vrcp.f32 %v355_v50  ;;  %v369_v54 = vand.u32 2147483648, %v355_v50  ;;  %v367_v46 = vand.u32 2147483647, %v355_v50  ;;  %vm363_vm14 = vweird.f32 %v355_v50 }
 0x15b   :  { %1461 = vrcp.f32 %v356_v52  ;;  %v384_v53 = vand.u32 2147483648, %v356_v52  ;;  %v382_v49 = vand.u32 2147483647, %v356_v52  ;;  %vm378_vm15 = vweird.f32 %v356_v52 }
 0x15c   :  { %v370_v62 = vor.u32 1.1754944e-38, %v369_v54  ;;  %vm368_vm2 = vcmp.eq.f32.partialorder %v367_v46, 8.507059e+37 }
 0x15d   :  { %vm383_vm3 = vcmp.eq.f32.partialorder %v382_v49, 8.507059e+37 }
 0x15e   :  { %v1458_v45 = vpop.eup %1457 }
 0x15f   :  { %v357_v44 = vadd.f32 1.0, %v1458_v45 }
 0x160   :  { %v1460_v42 = vpop.eup %1459 }
 0x161   :  { %v1462_v59 = vpop.eup %1461  ;;  %v359_v57 = vmul.f32 %v1460_v42, %v355_v50  ;;  %1463 = vrcp.f32 %v357_v44  ;;  %vm364_vm12 = vweird.f32 %v1460_v42  ;;  %vm393_vm5 = vweird.f32 %v357_v44 }
 0x162   :  { %v374_v0 = vmul.f32 %v1462_v59, %v356_v52  ;;  %1465 = vtanh.f32 %v345_v55  ;;  %vm379_vm13 = vweird.f32 %v1462_v59  ;;  %vm365_vm0 = vmor %vm363_vm14, %vm364_vm12 }
 0x163   :  { %v360_v38 = vsub.f32 1.0, %v359_v57  ;;  %vm380_vm1 = vmor %vm378_vm15, %vm379_vm13  ;;  %v385_v57 = vor.u32 1.1754944e-38, %v384_v53 }
 0x164   :  { %v375_v41 = vsub.f32 1.0, %v374_v0 }
 0x165   :  { %v361_v58 = vmul.f32 %v1460_v42, %v360_v38 }
 0x166   :  { %v376_v48 = vmul.f32 %v1462_v59, %v375_v41 }
 0x167   :  { %v1464_v56 = vpop.eup %1463  ;;  %v362_v51 = vadd.f32 %v1460_v42, %v361_v58 }
 0x168   :  { %v389_v61 = vmul.f32 %v1464_v56, %v357_v44  ;;  %v377_v45 = vadd.f32 %v1462_v59, %v376_v48  ;;  %v1466_v55 = vpop.eup %1465  ;;  %vm394_vm4 = vweird.f32 %v1464_v56  ;;  %v399_v48 = vand.u32 2147483648, %v357_v44 }
 0x169   :  { %v366_v0 = vsel %vm365_vm0, %v1460_v42, %v362_v51  ;;  %v397_v51 = vand.u32 2147483647, %v357_v44  ;;  %vm395_vm6 = vmor %vm393_vm5, %vm394_vm4 }
 0x16a   :  { %v390_v40 = vsub.f32 1.0, %v389_v61  ;;  %v371_v38 = vsel %vm368_vm2, %v370_v62, %v366_v0  ;;  %v381_v37 = vsel %vm380_vm1, %v1462_v59, %v377_v45  ;;  %v400_v42 = vor.u32 1.1754944e-38, %v399_v48 }
 0x16b   :  { %v386_v41 = vsel %vm383_vm3, %v385_v57, %v381_v37  ;;  %v405_v36 = vmul.f32 %v1466_v55, %v371_v38  ;;  %vm398_vm7 = vcmp.eq.f32.partialorder %v397_v51, 8.507059e+37 }
 0x16c   :  { %v404_v34 = vmul.f32 %v386_v41, %v2009_v63  ;;  %v391_v58 = vmul.f32 %v1464_v56, %v390_v40 }
 0x16e   :  { %v2089_v50 = vadd.f32 %v405_v36, %v404_v34  ;;  %v392_v52 = vadd.f32 %v1464_v56, %v391_v58 }
 0x170   :  { %1467 = vtanh.f32 %v2089_v50  ;;  %v396_v46 = vsel %vm395_vm6, %v1464_v56, %v392_v52  ;;  %v1394_v56 = vld [vmem:[%s2572_s0 + $0x58] sm:$0xff] }
 0x171   :  { %v401_v49 = vsel %vm398_vm7, %v400_v42, %v396_v46 }
 0x176   :  { %v1468_v59 = vpop.eup %1467 }
 0x177   :  { %v408_v37 = vmul.f32 %v1468_v59, %v401_v49 }
 0x179   :  { %437 = vmatmul.f32.vlgmr.msra.gmra.mxu0 %v408_v37  ;;  %457 = vmatmul.f32.vlgmr.msra.gmra.mxu1 %v408_v37 }
 0x17a   :  { %477 = vmatmul.f32.vlgmr.msra.gmra.mxu2 %v408_v37  ;;  %497 = vmatmul.f32.vlgmr.msra.gmra.mxu3 %v408_v37 }
 0x17b   :  { %739 = vmatpush.msra.mxu0 %v2708_v60  ;;  %759 = vmatpush.msra.mxu1 %v1679_v1  ;;  %v2735_v1 = vld [vmem:[#allocation8_spill] sm:$0xff] }
 0x17c   :  { %779 = vmatpush.msra.mxu2 %v1681_v2  ;;  %799 = vmatpush.msra.mxu3 %v1723_v17  ;;  %v2736_v2 = vld [vmem:[#allocation21_spill] sm:$0xff]  ;;  %v2751_v17 = vld [vmem:[#allocation20_spill] sm:$0xff] }
 0x17d   :  { %740 = vmatpush.msra.mxu0 %v1685_v3  ;;  %760 = vmatpush.msra.mxu1 %v1687_v4  ;;  %v2737_v3 = vld [vmem:[#allocation9_spill] sm:$0xff]  ;;  %v2738_v4 = vld [vmem:[#allocation10_spill] sm:$0xff] }
 0x17e   :  { %780 = vmatpush.msra.mxu2 %v1689_v5  ;;  %800 = vmatpush.msra.mxu3 %v1729_v19  ;;  %v2739_v5 = vld [vmem:[#allocation11_spill] sm:$0xff]  ;;  %v2753_v19 = vld [vmem:[#allocation22_spill] sm:$0xff] }
 0x17f   :  { %741 = vmatpush.msra.mxu0 %v1692_v6  ;;  %761 = vmatpush.msra.mxu1 %v1694_v7  ;;  %v2740_v6 = vld [vmem:[#allocation25_spill] sm:$0xff]  ;;  %v2741_v7 = vld [vmem:[#allocation12_spill] sm:$0xff] }
 0x180   :  { %781 = vmatpush.msra.mxu2 %v1698_v8  ;;  %801 = vmatpush.msra.mxu3 %v1741_v23  ;;  %v2742_v8 = vld [vmem:[#allocation13_spill] sm:$0xff]  ;;  %v2757_v23 = vld [vmem:[#allocation26_spill] sm:$0xff] }
 0x181   :  { %742 = vmatpush.msra.mxu0 %v1701_v9  ;;  %762 = vmatpush.msra.mxu1 %v1703_v10  ;;  %v2743_v9 = vld [vmem:[#allocation14_spill] sm:$0xff]  ;;  %v2744_v10 = vld [vmem:[#allocation29_spill] sm:$0xff] }
 0x182   :  { %782 = vmatpush.msra.mxu2 %v1707_v11  ;;  %802 = vmatpush.msra.mxu3 %v1753_v27  ;;  %v2745_v11 = vld [vmem:[#allocation15_spill] sm:$0xff] }
 0x183   :  { %743 = vmatpush.msra.mxu0 %v1710_v12  ;;  %763 = vmatpush.msra.mxu1 %v1712_v13  ;;  %v2746_v12 = vld [vmem:[#allocation16_spill] sm:$0xff]  ;;  %v2747_v13 = vld [vmem:[#allocation17_spill] sm:$0xff]  ;;  %v1391_v27 = vld [vmem:[%s2572_s0 + $0x40] sm:$0xff] }
 0x184   :  { %783 = vmatpush.msra.mxu2 %v1716_v14  ;;  %803 = vmatpush.msra.mxu3 %v1765_v31  ;;  %v2748_v14 = vld [vmem:[#allocation30_spill] sm:$0xff] }
 0x185   :  { %744 = vmatpush.msra.mxu0 %v1719_v15  ;;  %764 = vmatpush.msra.mxu1 %v1721_v16  ;;  %v2749_v15 = vld [vmem:[#allocation18_spill] sm:$0xff]  ;;  %v2750_v16 = vld [vmem:[#allocation19_spill] sm:$0xff] }
 0x186   :  { %784 = vmatpush.msra.mxu2 %v1727_v18  ;;  %804 = vmatpush.msra.mxu3 %v1777_v35  ;;  %v2752_v18 = vld [vmem:[#allocation31_spill] sm:$0xff] }
 0x187   :  { %745 = vmatpush.msra.mxu0 %v1732_v20  ;;  %765 = vmatpush.msra.mxu1 %v1734_v21  ;;  %v2754_v20 = vld [vmem:[#allocation23_spill] sm:$0xff]  ;;  %v2755_v21 = vld [vmem:[#allocation24_spill] sm:$0xff] }
 0x188   :  { %785 = vmatpush.msra.mxu2 %v1739_v22  ;;  %805 = vmatpush.msra.mxu3 %v1789_v39  ;;  %v2756_v22 = vld [vmem:[#allocation32_spill] sm:$0xff]  ;;  %v1393_v39 = vld [vmem:[%s2572_s0 + $0x50] sm:$0xff] }
 0x189   :  { %746 = vmatpush.msra.mxu0 %v1744_v24  ;;  %766 = vmatpush.msra.mxu1 %v1746_v25  ;;  %v2758_v24 = vld [vmem:[#allocation27_spill] sm:$0xff]  ;;  %v2759_v25 = vld [vmem:[#allocation28_spill] sm:$0xff] }
 0x18a   :  { %786 = vmatpush.msra.mxu2 %v1751_v26  ;;  %806 = vmatpush.msra.mxu3 %v1801_v43  ;;  %v2760_v26 = vld [vmem:[#allocation33_spill] sm:$0xff] }
 0x18b   :  { %747 = vmatpush.msra.mxu0 %v1756_v28  ;;  %767 = vmatpush.msra.mxu1 %v1758_v29  ;;  %v1392_v28 = vld [vmem:[%s2572_s0 + $0x48] sm:$0xff] }
 0x18c   :  { %787 = vmatpush.msra.mxu2 %v1763_v30  ;;  %807 = vmatpush.msra.mxu3 %v1813_v47 }
 0x18d   :  { %748 = vmatpush.msra.mxu0 %v1768_v32  ;;  %768 = vmatpush.msra.mxu1 %v1770_v33 }
 0x18e   :  { %788 = vmatpush.msra.mxu2 %v2735_v1  ;;  %808 = vmatpush.msra.mxu3 %v2736_v2 }
 0x18f   :  { %749 = vmatpush.msra.mxu0 %v2737_v3  ;;  %769 = vmatpush.msra.mxu1 %v2738_v4 }
 0x190   :  { %789 = vmatpush.msra.mxu2 %v2739_v5  ;;  %809 = vmatpush.msra.mxu3 %v2740_v6 }
 0x191   :  { %750 = vmatpush.msra.mxu0 %v2741_v7  ;;  %770 = vmatpush.msra.mxu1 %v2742_v8 }
 0x192   :  { %790 = vmatpush.msra.mxu2 %v2743_v9  ;;  %810 = vmatpush.msra.mxu3 %v2744_v10 }
 0x193   :  { %751 = vmatpush.msra.mxu0 %v2745_v11  ;;  %771 = vmatpush.msra.mxu1 %v2746_v12 }
 0x194   :  { %791 = vmatpush.msra.mxu2 %v2747_v13  ;;  %811 = vmatpush.msra.mxu3 %v2748_v14 }
 0x195   :  { %752 = vmatpush.msra.mxu0 %v2749_v15  ;;  %772 = vmatpush.msra.mxu1 %v2750_v16 }
 0x196   :  { %792 = vmatpush.msra.mxu2 %v2751_v17  ;;  %812 = vmatpush.msra.mxu3 %v2752_v18 }
 0x197   :  { %753 = vmatpush.msra.mxu0 %v2753_v19  ;;  %773 = vmatpush.msra.mxu1 %v2754_v20 }
 0x198   :  { %793 = vmatpush.msra.mxu2 %v2755_v21  ;;  %813 = vmatpush.msra.mxu3 %v2756_v22  ;;  %v2175_v21 = vld [vmem:[#allocation4 + $0x1e8] sm:$0xff]  ;;  %v2178_v22 = vld [vmem:[#allocation4 + $0x1f0] sm:$0xff] }
 0x199   :  { %754 = vmatpush.msra.mxu0 %v2757_v23  ;;  %774 = vmatpush.msra.mxu1 %v2758_v24  ;;  %v2181_v23 = vld [vmem:[#allocation4 + $0x1f8] sm:$0xff]  ;;  %v2184_v24 = vld [vmem:[#allocation4 + $0x1c0] sm:$0xff] }
 0x19a   :  { %794 = vmatpush.msra.mxu2 %v2759_v25  ;;  %814 = vmatpush.msra.mxu3 %v2760_v26  ;;  %v2187_v25 = vld [vmem:[#allocation4 + $0x1c8] sm:$0xff]  ;;  %v2190_v26 = vld [vmem:[#allocation4 + $0x1d0] sm:$0xff] }
 0x1f6   :  { %v438_v29 = vpop.f32.mrf.mxu0  ;;  %v458_v30 = vpop.f32.mrf.mxu1 }
 0x1f7   :  { %v501_v31 = vadd.f32 %v1391_v27, %v438_v29  ;;  %v502_v32 = vadd.f32 %v1392_v28, %v458_v30  ;;  %v2193_v27 = vld [vmem:[#allocation4 + $0x1d8] sm:$0xff]  ;;  %v2196_v28 = vld [vmem:[#allocation4 + $0x1a0] sm:$0xff]  ;;  %v2199_v29 = vld [vmem:[#allocation4 + $0x1a8] sm:$0xff] }
 0x1f8   :  { %v2202_v30 = vld [vmem:[#allocation4 + $0x1b0] sm:$0xff] }
 0x1f9   :  { %v1395_v33 = vmul.f32 -1.442695, %v501_v31  ;;  %v1396_v35 = vmul.f32 -1.442695, %v502_v32  ;;  %v2205_v31 = vld [vmem:[#allocation4 + $0x1b8] sm:$0xff]  ;;  %v2208_v32 = vld [vmem:[#allocation4 + $0x180] sm:$0xff] }
 0x1fb   :  { %1469 = vpow2.f32 %v1395_v33  ;;  %v2211_v33 = vld [vmem:[#allocation4 + $0x188] sm:$0xff] }
 0x1fc   :  { %1471 = vpow2.f32 %v1396_v35  ;;  %v2214_v35 = vld [vmem:[#allocation4 + $0x190] sm:$0xff] }
 0x1fd   :  { %v478_v43 = vpop.f32.mrf.mxu2  ;;  %v498_v44 = vpop.f32.mrf.mxu3 }
 0x1fe   :  { %v503_v47 = vadd.f32 %v1393_v39, %v478_v43  ;;  %v504_v62 = vadd.f32 %v1394_v56, %v498_v44  ;;  %v2217_v39 = vld [vmem:[#allocation4 + $0x198] sm:$0xff]  ;;  %v2220_v43 = vld [vmem:[#allocation4 + $0x160] sm:$0xff] }
 0x1ff   :  { %v2241_v56 = vld [vmem:[#allocation4 + $0x158] sm:$0xff]  ;;  %v2244_v44 = vld [vmem:[#allocation4 + $0x120] sm:$0xff] }
 0x200   :  { %v1397_v60 = vmul.f32 -1.442695, %v503_v47  ;;  %v2223_v47 = vld [vmem:[#allocation4 + $0x168] sm:$0xff] }
 0x201   :  { %v1470_v63 = vpop.eup %1469 }
 0x202   :  { %v1472_v34 = vpop.eup %1471  ;;  %v514_v36 = vadd.f32 1.0, %v1470_v63  ;;  %1473 = vpow2.f32 %v1397_v60  ;;  %v2226_v60 = vld [vmem:[#allocation4 + $0x170] sm:$0xff]  ;;  %v2229_v63 = vld [vmem:[#allocation4 + $0x178] sm:$0xff] }
 0x203   :  { %v515_v40 = vadd.f32 1.0, %v1472_v34  ;;  %v2232_v34 = vld [vmem:[#allocation4 + $0x140] sm:$0xff] }
 0x204   :  { %1475 = vrcp.f32 %v514_v36  ;;  %v528_v41 = vand.u32 2147483648, %v514_v36  ;;  %v526_v48 = vand.u32 2147483647, %v514_v36  ;;  %vm522_vm10 = vweird.f32 %v514_v36 }
 0x205   :  { %1477 = vrcp.f32 %v515_v40  ;;  %v543_v58 = vand.u32 2147483648, %v515_v40  ;;  %v541_v46 = vand.u32 2147483647, %v515_v40  ;;  %vm537_vm11 = vweird.f32 %v515_v40 }
 0x206   :  { %v529_v37 = vor.u32 1.1754944e-38, %v528_v41  ;;  %vm527_vm14 = vcmp.eq.f32.partialorder %v526_v48, 8.507059e+37  ;;  %v2274_v41 = vld [vmem:[#allocation4 + $0xf0] sm:$0xff]  ;;  %v2283_v48 = vld [vmem:[#allocation4 + $0xc8] sm:$0xff] }
 0x207   :  { %v544_v2 = vor.u32 1.1754944e-38, %v543_v58  ;;  %vm542_vm15 = vcmp.eq.f32.partialorder %v541_v46, 8.507059e+37  ;;  %v2277_v58 = vld [vmem:[#allocation4 + $0xf8] sm:$0xff] }
 0x208   :  { %v1474_v54 = vpop.eup %1473  ;;  %v2289_v46 = vld [vmem:[#allocation4 + $0xd8] sm:$0xff] }
 0x209   :  { %v516_v53 = vadd.f32 1.0, %v1474_v54  ;;  %v2247_v54 = vld [vmem:[#allocation4 + $0x128] sm:$0xff]  ;;  %2762 = vst [vmem:[#allocation8_spill] sm:$0xff] %v2289_v46 }
 0x20a   :  { %v1476_v61 = vpop.eup %1475 }
 0x20b   :  { %v1478_v45 = vpop.eup %1477  ;;  %v518_v57 = vmul.f32 %v1476_v61, %v514_v36  ;;  %1479 = vrcp.f32 %v516_v53  ;;  %vm523_vm8 = vweird.f32 %v1476_v61  ;;  %v558_v14 = vand.u32 2147483648, %v516_v53  ;;  %v2235_v36 = vld [vmem:[#allocation4 + $0x148] sm:$0xff] }
 0x20c   :  { %v533_v0 = vmul.f32 %v1478_v45, %v515_v40  ;;  %1481 = vtanh.f32 %v504_v62  ;;  %vm538_vm9 = vweird.f32 %v1478_v45  ;;  %vm524_vm12 = vmor %vm522_vm10, %vm523_vm8  ;;  %vm552_vm1 = vweird.f32 %v516_v53  ;;  %v2238_v40 = vld [vmem:[#allocation4 + $0x150] sm:$0xff]  ;;  %v2256_v62 = vld [vmem:[#allocation4 + $0x100] sm:$0xff] }
 0x20d   :  { %v519_v55 = vsub.f32 1.0, %v518_v57  ;;  %vm539_vm13 = vmor %vm537_vm11, %vm538_vm9  ;;  %v556_v15 = vand.u32 2147483647, %v516_v53  ;;  %v559_v17 = vor.u32 1.1754944e-38, %v558_v14  ;;  %v2262_v57 = vld [vmem:[#allocation4 + $0x110] sm:$0xff]  ;;  %v2340_v14 = vld [vmem:[#allocation4 + $0x20] sm:$0xff] }
 0x20e   :  { %v534_v38 = vsub.f32 1.0, %v533_v0  ;;  %v2265_v0 = vld [vmem:[#allocation4 + $0x118] sm:$0xff]  ;;  %2779 = vst [vmem:[#allocation31_spill] sm:$0xff] %v2340_v14 }
 0x20f   :  { %v520_v52 = vmul.f32 %v1476_v61, %v519_v55  ;;  %vm557_vm3 = vcmp.eq.f32.partialorder %v556_v15, 8.507059e+37  ;;  %v2268_v55 = vld [vmem:[#allocation4 + $0xe0] sm:$0xff]  ;;  %v2343_v15 = vld [vmem:[#allocation4 + $0x28] sm:$0xff] }
 0x210   :  { %v535_v51 = vmul.f32 %v1478_v45, %v534_v38  ;;  %v2271_v38 = vld [vmem:[#allocation4 + $0xe8] sm:$0xff]  ;;  %2780 = vst [vmem:[#allocation22_spill] sm:$0xff] %v2343_v15 }
 0x211   :  { %v1480_v42 = vpop.eup %1479  ;;  %v521_v59 = vadd.f32 %v1476_v61, %v520_v52  ;;  %v2280_v52 = vld [vmem:[#allocation4 + $0xc0] sm:$0xff] }
 0x212   :  { %v548_v49 = vmul.f32 %v1480_v42, %v516_v53  ;;  %v536_v1 = vadd.f32 %v1478_v45, %v535_v51  ;;  %v1482_v4 = vpop.eup %1481  ;;  %vm553_vm0 = vweird.f32 %v1480_v42  ;;  %v2250_v53 = vld [vmem:[#allocation4 + $0x130] sm:$0xff] }
 0x213   :  { %v525_v3 = vsel %vm524_vm12, %v1476_v61, %v521_v59  ;;  %vm554_vm2 = vmor %vm552_vm1, %vm553_vm0  ;;  %v2253_v61 = vld [vmem:[#allocation4 + $0x138] sm:$0xff]  ;;  %v2286_v51 = vld [vmem:[#allocation4 + $0xd0] sm:$0xff] }
 0x214   :  { %v549_v5 = vsub.f32 1.0, %v548_v49  ;;  %v530_v6 = vsel %vm527_vm14, %v529_v37, %v525_v3  ;;  %v540_v7 = vsel %vm539_vm13, %v1478_v45, %v536_v1  ;;  %v2259_v45 = vld [vmem:[#allocation4 + $0x108] sm:$0xff]  ;;  %2761 = vst [vmem:[#allocation7_spill] sm:$0xff] %v2286_v51  ;;  %v2298_v49 = vld [vmem:[#allocation4 + $0xb0] sm:$0xff]  ;;  %v2301_v37 = vld [vmem:[#allocation4 + $0xb8] sm:$0xff] }
 0x215   :  { %v545_v8 = vsel %vm542_vm15, %v544_v2, %v540_v7  ;;  %v564_v9 = vmul.f32 %v1482_v4, %v530_v6  ;;  %v2295_v59 = vld [vmem:[#allocation4 + $0xa8] sm:$0xff]  ;;  %2765 = vst [vmem:[#allocation10_spill] sm:$0xff] %v2298_v49  ;;  %v2304_v1 = vld [vmem:[#allocation4 + $0x80] sm:$0xff]  ;;  %v2310_v3 = vld [vmem:[#allocation4 + $0x90] sm:$0xff] }
 0x216   :  { %v563_v10 = vmul.f32 %v545_v8, %v2089_v50  ;;  %v550_v11 = vmul.f32 %v1480_v42, %v549_v5  ;;  %v2172_v50 = vld [vmem:[#allocation4 + $0x1e0] sm:$0xff]  ;;  %2764 = vst [vmem:[#allocation9_spill] sm:$0xff] %v2295_v59  ;;  %v2307_v2 = vld [vmem:[#allocation4 + $0x88] sm:$0xff]  ;;  %v2313_v4 = vld [vmem:[#allocation4 + $0x98] sm:$0xff] }
 0x217   :  { %2766 = vst [vmem:[#allocation11_spill] sm:$0xff] %v2301_v37  ;;  %v2316_v5 = vld [vmem:[#allocation4 + $0x60] sm:$0xff]  ;;  %v2319_v6 = vld [vmem:[#allocation4 + $0x68] sm:$0xff]  ;;  %v2322_v7 = vld [vmem:[#allocation4 + $0x70] sm:$0xff] }
 0x218   :  { %v2169_v12 = vadd.f32 %v564_v9, %v563_v10  ;;  %v551_v13 = vadd.f32 %v1480_v42, %v550_v11  ;;  %2767 = vst [vmem:[#allocation25_spill] sm:$0xff] %v2304_v1  ;;  %v2325_v8 = vld [vmem:[#allocation4 + $0x78] sm:$0xff]  ;;  %v2328_v9 = vld [vmem:[#allocation4 + $0x40] sm:$0xff]  ;;  %v2331_v10 = vld [vmem:[#allocation4 + $0x48] sm:$0xff] }
 0x219   :  { %2768 = vst [vmem:[#allocation12_spill] sm:$0xff] %v2307_v2  ;;  %v2334_v11 = vld [vmem:[#allocation4 + $0x50] sm:$0xff] }
 0x21a   :  { %1483 = vtanh.f32 %v2169_v12  ;;  %v555_v16 = vsel %vm554_vm2, %v1480_v42, %v551_v13  ;;  %v2292_v42 = vld [vmem:[#allocation4 + $0xa0] sm:$0xff]  ;;  %2769 = vst [vmem:[#allocation13_spill] sm:$0xff] %v2310_v3  ;;  %v2337_v13 = vld [vmem:[#allocation4 + $0x58] sm:$0xff] }
 0x21b   :  { %v560_v19 = vsel %vm557_vm3, %v559_v17, %v555_v16  ;;  %2763 = vst [vmem:[#allocation21_spill] sm:$0xff] %v2292_v42  ;;  %v2346_v16 = vld [vmem:[#allocation4 + $0x30] sm:$0xff]  ;;  %v2349_v17 = vld [vmem:[#allocation4 + $0x38] sm:$0xff] }
 0x21c   :  { %2770 = vst [vmem:[#allocation14_spill] sm:$0xff] %v2313_v4 }
 0x21d   :  { %2771 = vst [vmem:[#allocation29_spill] sm:$0xff] %v2316_v5 }
 0x21e   :  { %2772 = vst [vmem:[#allocation15_spill] sm:$0xff] %v2319_v6 }
 0x21f   :  { %2773 = vst [vmem:[#allocation16_spill] sm:$0xff] %v2322_v7 }
 0x220   :  { %v1484_v18 = vpop.eup %1483  ;;  %2774 = vst [vmem:[#allocation17_spill] sm:$0xff] %v2325_v8 }
 0x221   :  { %v567_v20 = vmul.f32 %v1484_v18, %v560_v19  ;;  %2775 = vst [vmem:[#allocation30_spill] sm:$0xff] %v2328_v9  ;;  %v2352_v18 = vld [vmem:[#allocation4] sm:$0xff]  ;;  %v2355_v19 = vld [vmem:[#allocation4 + $0x8] sm:$0xff] }
 0x222   :  { %2776 = vst [vmem:[#allocation18_spill] sm:$0xff] %v2331_v10 }
 0x223   :  { %596 = vmatmul.f32.vlgmr.msrb.gmra.mxu0 %v567_v20  ;;  %616 = vmatmul.f32.vlgmr.msrb.gmra.mxu1 %v567_v20  ;;  %2777 = vst [vmem:[#allocation19_spill] sm:$0xff] %v2334_v11 }
 0x224   :  { %636 = vmatmul.f32.vlgmr.msrb.gmra.mxu2 %v567_v20  ;;  %656 = vmatmul.f32.vlgmr.msrb.gmra.mxu3 %v567_v20  ;;  %2778 = vst [vmem:[#allocation20_spill] sm:$0xff] %v2337_v13  ;;  %v2358_v20 = vld [vmem:[#allocation4 + $0x10] sm:$0xff] }
 0x225   :  { %898 = vmatpush.msrb.mxu0 %v2172_v50  ;;  %918 = vmatpush.msrb.mxu1 %v2175_v21  ;;  %2781 = vst [vmem:[#allocation23_spill] sm:$0xff] %v2346_v16 }
 0x226   :  { %938 = vmatpush.msrb.mxu2 %v2178_v22  ;;  %958 = vmatpush.msrb.mxu3 %v2181_v23  ;;  %2782 = vst [vmem:[#allocation24_spill] sm:$0xff] %v2349_v17 }
 0x227   :  { %899 = vmatpush.msrb.mxu0 %v2184_v24  ;;  %919 = vmatpush.msrb.mxu1 %v2187_v25  ;;  %2783 = vst [vmem:[#allocation32_spill] sm:$0xff] %v2352_v18 }
 0x228   :  { %939 = vmatpush.msrb.mxu2 %v2190_v26  ;;  %959 = vmatpush.msrb.mxu3 %v2193_v27  ;;  %2784 = vst [vmem:[#allocation26_spill] sm:$0xff] %v2355_v19 }
 0x229   :  { %900 = vmatpush.msrb.mxu0 %v2196_v28  ;;  %920 = vmatpush.msrb.mxu1 %v2199_v29  ;;  %2785 = vst [vmem:[#allocation27_spill] sm:$0xff] %v2358_v20 }
 0x22a   :  { %940 = vmatpush.msrb.mxu2 %v2202_v30  ;;  %960 = vmatpush.msrb.mxu3 %v2205_v31 }
 0x22b   :  { %901 = vmatpush.msrb.mxu0 %v2208_v32  ;;  %921 = vmatpush.msrb.mxu1 %v2211_v33 }
 0x22c   :  { %941 = vmatpush.msrb.mxu2 %v2214_v35  ;;  %961 = vmatpush.msrb.mxu3 %v2217_v39 }
 0x22d   :  { %902 = vmatpush.msrb.mxu0 %v2220_v43  ;;  %922 = vmatpush.msrb.mxu1 %v2223_v47 }
 0x22e   :  { %942 = vmatpush.msrb.mxu2 %v2226_v60  ;;  %962 = vmatpush.msrb.mxu3 %v2229_v63 }
 0x22f   :  { %903 = vmatpush.msrb.mxu0 %v2232_v34  ;;  %923 = vmatpush.msrb.mxu1 %v2235_v36 }
 0x230   :  { %943 = vmatpush.msrb.mxu2 %v2238_v40  ;;  %963 = vmatpush.msrb.mxu3 %v2241_v56 }
 0x231   :  { %904 = vmatpush.msrb.mxu0 %v2244_v44  ;;  %924 = vmatpush.msrb.mxu1 %v2247_v54 }
 0x232   :  { %944 = vmatpush.msrb.mxu2 %v2250_v53  ;;  %964 = vmatpush.msrb.mxu3 %v2253_v61 }
 0x233   :  { %905 = vmatpush.msrb.mxu0 %v2256_v62  ;;  %925 = vmatpush.msrb.mxu1 %v2259_v45 }
 0x234   :  { %945 = vmatpush.msrb.mxu2 %v2262_v57  ;;  %965 = vmatpush.msrb.mxu3 %v2265_v0 }
 0x235   :  { %906 = vmatpush.msrb.mxu0 %v2268_v55  ;;  %926 = vmatpush.msrb.mxu1 %v2271_v38 }
 0x236   :  { %946 = vmatpush.msrb.mxu2 %v2274_v41  ;;  %966 = vmatpush.msrb.mxu3 %v2277_v58 }
 0x237   :  { %907 = vmatpush.msrb.mxu0 %v2280_v52  ;;  %927 = vmatpush.msrb.mxu1 %v2283_v48 }
 0x238   :  { %947 = vmatpush.msrb.mxu2 %v2286_v51  ;;  %967 = vmatpush.msrb.mxu3 %v2289_v46 }
 0x239   :  { %908 = vmatpush.msrb.mxu0 %v2292_v42  ;;  %928 = vmatpush.msrb.mxu1 %v2295_v59 }
 0x23a   :  { %948 = vmatpush.msrb.mxu2 %v2298_v49  ;;  %968 = vmatpush.msrb.mxu3 %v2301_v37 }
 0x23b   :  { %909 = vmatpush.msrb.mxu0 %v2304_v1  ;;  %929 = vmatpush.msrb.mxu1 %v2307_v2 }
 0x23c   :  { %949 = vmatpush.msrb.mxu2 %v2310_v3  ;;  %969 = vmatpush.msrb.mxu3 %v2313_v4 }
 0x23d   :  { %910 = vmatpush.msrb.mxu0 %v2316_v5  ;;  %930 = vmatpush.msrb.mxu1 %v2319_v6 }
 0x23e   :  { %950 = vmatpush.msrb.mxu2 %v2322_v7  ;;  %970 = vmatpush.msrb.mxu3 %v2325_v8 }
 0x23f   :  { %911 = vmatpush.msrb.mxu0 %v2328_v9  ;;  %931 = vmatpush.msrb.mxu1 %v2331_v10 }
 0x240   :  { %951 = vmatpush.msrb.mxu2 %v2334_v11  ;;  %971 = vmatpush.msrb.mxu3 %v2337_v13 }
 0x241   :  { %912 = vmatpush.msrb.mxu0 %v2340_v14  ;;  %932 = vmatpush.msrb.mxu1 %v2343_v15  ;;  %v2361_v15 = vld [vmem:[#allocation4 + $0x18] sm:$0xff] }
 0x242   :  { %952 = vmatpush.msrb.mxu2 %v2346_v16  ;;  %972 = vmatpush.msrb.mxu3 %v2349_v17  ;;  %2786 = vst [vmem:[#allocation28_spill] sm:$0xff] %v2361_v15  ;;  %v1398_v17 = vld [vmem:[%s2572_s0 + $0x60] sm:$0xff] }
 0x243   :  { %913 = vmatpush.msrb.mxu0 %v2352_v18  ;;  %933 = vmatpush.msrb.mxu1 %v2355_v19  ;;  %v1399_v18 = vld [vmem:[%s2572_s0 + $0x68] sm:$0xff] }
 0x244   :  { %953 = vmatpush.msrb.mxu2 %v2358_v20  ;;  %973 = vmatpush.msrb.mxu3 %v2361_v15  ;;  %v1400_v20 = vld [vmem:[%s2572_s0 + $0x70] sm:$0xff] }
 0x2a0   :  { %v597_v16 = vpop.f32.mrf.mxu0  ;;  %v617_v14 = vpop.f32.mrf.mxu1 }
 0x2a1   :  { %v660_v13 = vadd.f32 %v1398_v17, %v597_v16  ;;  %v661_v19 = vadd.f32 %v1399_v18, %v617_v14 }
 0x2a3   :  { %v1402_v11 = vmul.f32 -1.442695, %v660_v13  ;;  %v1403_v10 = vmul.f32 -1.442695, %v661_v19  ;;  %v1401_v13 = vld [vmem:[%s2572_s0 + $0x78] sm:$0xff] }
 0x2a5   :  { %1485 = vpow2.f32 %v1402_v11 }
 0x2a6   :  { %1487 = vpow2.f32 %v1403_v10 }
 0x2a7   :  { %v637_v15 = vpop.f32.mrf.mxu2  ;;  %v657_v11 = vpop.f32.mrf.mxu3 }
 0x2a8   :  { %v662_v9 = vadd.f32 %v1400_v20, %v637_v15  ;;  %v663_v18 = vadd.f32 %v1401_v13, %v657_v11 }
 0x2aa   :  { %v1404_v8 = vmul.f32 -1.442695, %v662_v9 }
 0x2ab   :  { %v1486_v7 = vpop.eup %1485 }
 0x2ac   :  { %v1488_v6 = vpop.eup %1487  ;;  %v673_v5 = vadd.f32 1.0, %v1486_v7  ;;  %1489 = vpow2.f32 %v1404_v8 }
 0x2ad   :  { %v674_v4 = vadd.f32 1.0, %v1488_v6 }
 0x2ae   :  { %1491 = vrcp.f32 %v673_v5  ;;  %v687_v7 = vand.u32 2147483648, %v673_v5  ;;  %v685_v3 = vand.u32 2147483647, %v673_v5  ;;  %vm681_vm6 = vweird.f32 %v673_v5 }
 0x2af   :  { %1493 = vrcp.f32 %v674_v4  ;;  %v702_v6 = vand.u32 2147483648, %v674_v4  ;;  %v700_v1 = vand.u32 2147483647, %v674_v4  ;;  %vm696_vm7 = vweird.f32 %v674_v4 }
 0x2b0   :  { %v688_v11 = vor.u32 1.1754944e-38, %v687_v7  ;;  %vm686_vm10 = vcmp.eq.f32.partialorder %v685_v3, 8.507059e+37  ;;  %v2793_v7 = vld [vmem:[#allocation25_spill] sm:$0xff] }
 0x2b1   :  { %vm701_vm11 = vcmp.eq.f32.partialorder %v700_v1, 8.507059e+37 }
 0x2b2   :  { %v1490_v14 = vpop.eup %1489 }
 0x2b3   :  { %v675_v16 = vadd.f32 1.0, %v1490_v14 }
 0x2b4   :  { %v1492_v17 = vpop.eup %1491 }
 0x2b5   :  { %v1494_v10 = vpop.eup %1493  ;;  %v677_v19 = vmul.f32 %v1492_v17, %v673_v5  ;;  %1495 = vrcp.f32 %v675_v16  ;;  %vm682_vm4 = vweird.f32 %v1492_v17  ;;  %vm711_vm13 = vweird.f32 %v675_v16 }
 0x2b6   :  { %v692_v9 = vmul.f32 %v1494_v10, %v674_v4  ;;  %1497 = vtanh.f32 %v663_v18  ;;  %vm697_vm5 = vweird.f32 %v1494_v10  ;;  %vm683_vm8 = vmor %vm681_vm6, %vm682_vm4 }
 0x2b7   :  { %v678_v15 = vsub.f32 1.0, %v677_v19  ;;  %vm698_vm9 = vmor %vm696_vm7, %vm697_vm5  ;;  %v703_v19 = vor.u32 1.1754944e-38, %v702_v6  ;;  %v2794_v6 = vld [vmem:[#allocation12_spill] sm:$0xff] }
 0x2b8   :  { %v693_v20 = vsub.f32 1.0, %v692_v9 }
 0x2b9   :  { %v679_v8 = vmul.f32 %v1492_v17, %v678_v15 }
 0x2ba   :  { %v694_v2 = vmul.f32 %v1494_v10, %v693_v20 }
 0x2bb   :  { %v1496_v37 = vpop.eup %1495  ;;  %v680_v49 = vadd.f32 %v1492_v17, %v679_v8 }
 0x2bc   :  { %v707_v13 = vmul.f32 %v1496_v37, %v675_v16  ;;  %v695_v14 = vadd.f32 %v1494_v10, %v694_v2  ;;  %v1498_v18 = vpop.eup %1497  ;;  %vm712_vm12 = vweird.f32 %v1496_v37  ;;  %v717_v2 = vand.u32 2147483648, %v675_v16 }
 0x2bd   :  { %v684_v9 = vsel %vm683_vm8, %v1492_v17, %v680_v49  ;;  %v715_v49 = vand.u32 2147483647, %v675_v16  ;;  %vm713_vm14 = vmor %vm711_vm13, %vm712_vm12  ;;  %v2792_v16 = vld [vmem:[#allocation11_spill] sm:$0xff] }
 0x2be   :  { %v708_v59 = vsub.f32 1.0, %v707_v13  ;;  %v689_v15 = vsel %vm686_vm10, %v688_v11, %v684_v9  ;;  %v699_v42 = vsel %vm698_vm9, %v1494_v10, %v695_v14  ;;  %v718_v17 = vor.u32 1.1754944e-38, %v717_v2  ;;  %v2795_v13 = vld [vmem:[#allocation13_spill] sm:$0xff]  ;;  %v2796_v11 = vld [vmem:[#allocation14_spill] sm:$0xff]  ;;  %v2799_v9 = vld [vmem:[#allocation16_spill] sm:$0xff] }
 0x2bf   :  { %v704_v20 = vsel %vm701_vm11, %v703_v19, %v699_v42  ;;  %v723_v46 = vmul.f32 %v1498_v18, %v689_v15  ;;  %vm716_vm15 = vcmp.eq.f32.partialorder %v715_v49, 8.507059e+37  ;;  %v2797_v14 = vld [vmem:[#allocation29_spill] sm:$0xff]  ;;  %v2798_v19 = vld [vmem:[#allocation15_spill] sm:$0xff]  ;;  %v2801_v15 = vld [vmem:[#allocation30_spill] sm:$0xff] }
 0x2c0   :  { %v722_v51 = vmul.f32 %v704_v20, %v2169_v12  ;;  %v709_v8 = vmul.f32 %v1496_v37, %v708_v59  ;;  %v2787_v12 = vld [vmem:[#allocation7_spill] sm:$0xff]  ;;  %v2790_v59 = vld [vmem:[#allocation9_spill] sm:$0xff]  ;;  %v2802_v20 = vld [vmem:[#allocation18_spill] sm:$0xff] }
 0x2c1   :  { %v2800_v18 = vld [vmem:[#allocation17_spill] sm:$0xff]  ;;  %v2805_v2 = vld [vmem:[#allocation31_spill] sm:$0xff]  ;;  %v2806_v49 = vld [vmem:[#allocation22_spill] sm:$0xff] }
 0x2c2   :  { %v2377_v5 = vadd.f32 %v723_v46, %v722_v51  ;;  %v710_v4 = vadd.f32 %v1496_v37, %v709_v8  ;;  %v2788_v51 = vld [vmem:[#allocation8_spill] sm:$0xff]  ;;  %v2789_v46 = vld [vmem:[#allocation21_spill] sm:$0xff]  ;;  %v2803_v8 = vld [vmem:[#allocation19_spill] sm:$0xff] }
 0x2c4   :  { %1499 = vtanh.f32 %v2377_v5  ;;  %v714_v3 = vsel %vm713_vm14, %v1496_v37, %v710_v4  ;;  %v2791_v37 = vld [vmem:[#allocation10_spill] sm:$0xff]  ;;  %v2804_v4 = vld [vmem:[#allocation20_spill] sm:$0xff] }
 0x2c5   :  { %v719_v1 = vsel %vm716_vm15, %v718_v17, %v714_v3  ;;  %v2807_v3 = vld [vmem:[#allocation23_spill] sm:$0xff]  ;;  %v2808_v17 = vld [vmem:[#allocation24_spill] sm:$0xff] }
 0x2ca   :  { %v1500_v10 = vpop.eup %1499 }
 0x2cb   :  { %v726_v42 = vmul.f32 %v1500_v10, %v719_v1  ;;  %v2809_v10 = vld [vmem:[#allocation32_spill] sm:$0xff]  ;;  %v2810_v1 = vld [vmem:[#allocation26_spill] sm:$0xff] }
 0x2cd   :  { %755 = vmatmul.f32.vlgmr.msra.gmra.mxu0 %v726_v42  ;;  %775 = vmatmul.f32.vlgmr.msra.gmra.mxu1 %v726_v42 }
 0x2ce   :  { %795 = vmatmul.f32.vlgmr.msra.gmra.mxu2 %v726_v42  ;;  %815 = vmatmul.f32.vlgmr.msra.gmra.mxu3 %v726_v42  ;;  %v2811_v42 = vld [vmem:[#allocation27_spill] sm:$0xff] }
 0x2cf   :  { %1057 = vmatpush.msra.mxu0 %v2172_v50  ;;  %1077 = vmatpush.msra.mxu1 %v2175_v21 }
 0x2d0   :  { %1097 = vmatpush.msra.mxu2 %v2178_v22  ;;  %1117 = vmatpush.msra.mxu3 %v2181_v23 }
 0x2d1   :  { %1058 = vmatpush.msra.mxu0 %v2184_v24  ;;  %1078 = vmatpush.msra.mxu1 %v2187_v25 }
 0x2d2   :  { %1098 = vmatpush.msra.mxu2 %v2190_v26  ;;  %1118 = vmatpush.msra.mxu3 %v2193_v27 }
 0x2d3   :  { %1059 = vmatpush.msra.mxu0 %v2196_v28  ;;  %1079 = vmatpush.msra.mxu1 %v2199_v29 }
 0x2d4   :  { %1099 = vmatpush.msra.mxu2 %v2202_v30  ;;  %1119 = vmatpush.msra.mxu3 %v2205_v31 }
 0x2d5   :  { %1060 = vmatpush.msra.mxu0 %v2208_v32  ;;  %1080 = vmatpush.msra.mxu1 %v2211_v33 }
 0x2d6   :  { %1100 = vmatpush.msra.mxu2 %v2214_v35  ;;  %1120 = vmatpush.msra.mxu3 %v2217_v39 }
 0x2d7   :  { %1061 = vmatpush.msra.mxu0 %v2220_v43  ;;  %1081 = vmatpush.msra.mxu1 %v2223_v47 }
 0x2d8   :  { %1101 = vmatpush.msra.mxu2 %v2226_v60  ;;  %1121 = vmatpush.msra.mxu3 %v2229_v63 }
 0x2d9   :  { %1062 = vmatpush.msra.mxu0 %v2232_v34  ;;  %1082 = vmatpush.msra.mxu1 %v2235_v36 }
 0x2da   :  { %1102 = vmatpush.msra.mxu2 %v2238_v40  ;;  %1122 = vmatpush.msra.mxu3 %v2241_v56 }
 0x2db   :  { %1063 = vmatpush.msra.mxu0 %v2244_v44  ;;  %1083 = vmatpush.msra.mxu1 %v2247_v54 }
 0x2dc   :  { %1103 = vmatpush.msra.mxu2 %v2250_v53  ;;  %1123 = vmatpush.msra.mxu3 %v2253_v61 }
 0x2dd   :  { %1064 = vmatpush.msra.mxu0 %v2256_v62  ;;  %1084 = vmatpush.msra.mxu1 %v2259_v45 }
 0x2de   :  { %1104 = vmatpush.msra.mxu2 %v2262_v57  ;;  %1124 = vmatpush.msra.mxu3 %v2265_v0 }
 0x2df   :  { %1065 = vmatpush.msra.mxu0 %v2268_v55  ;;  %1085 = vmatpush.msra.mxu1 %v2271_v38 }
 0x2e0   :  { %1105 = vmatpush.msra.mxu2 %v2274_v41  ;;  %1125 = vmatpush.msra.mxu3 %v2277_v58 }
 0x2e1   :  { %1066 = vmatpush.msra.mxu0 %v2280_v52  ;;  %1086 = vmatpush.msra.mxu1 %v2283_v48 }
 0x2e2   :  { %1106 = vmatpush.msra.mxu2 %v2787_v12  ;;  %1126 = vmatpush.msra.mxu3 %v2788_v51 }
 0x2e3   :  { %1067 = vmatpush.msra.mxu0 %v2789_v46  ;;  %1087 = vmatpush.msra.mxu1 %v2790_v59 }
 0x2e4   :  { %1107 = vmatpush.msra.mxu2 %v2791_v37  ;;  %1127 = vmatpush.msra.mxu3 %v2792_v16 }
 0x2e5   :  { %1068 = vmatpush.msra.mxu0 %v2793_v7  ;;  %1088 = vmatpush.msra.mxu1 %v2794_v6 }
 0x2e6   :  { %1108 = vmatpush.msra.mxu2 %v2795_v13  ;;  %1128 = vmatpush.msra.mxu3 %v2796_v11 }
 0x2e7   :  { %1069 = vmatpush.msra.mxu0 %v2797_v14  ;;  %1089 = vmatpush.msra.mxu1 %v2798_v19 }
 0x2e8   :  { %1109 = vmatpush.msra.mxu2 %v2799_v9  ;;  %1129 = vmatpush.msra.mxu3 %v2800_v18 }
 0x2e9   :  { %1070 = vmatpush.msra.mxu0 %v2801_v15  ;;  %1090 = vmatpush.msra.mxu1 %v2802_v20  ;;  %v2812_v15 = vld [vmem:[#allocation28_spill] sm:$0xff] }
 0x2ea   :  { %1110 = vmatpush.msra.mxu2 %v2803_v8  ;;  %1130 = vmatpush.msra.mxu3 %v2804_v4  ;;  %v1405_v4 = vld [vmem:[%s2572_s0 + $0x80] sm:$0xff] }
 0x2eb   :  { %1071 = vmatpush.msra.mxu0 %v2805_v2  ;;  %1091 = vmatpush.msra.mxu1 %v2806_v49  ;;  %v1406_v49 = vld [vmem:[%s2572_s0 + $0x88] sm:$0xff] }
 0x2ec   :  { %1111 = vmatpush.msra.mxu2 %v2807_v3  ;;  %1131 = vmatpush.msra.mxu3 %v2808_v17 }
 0x2ed   :  { %1072 = vmatpush.msra.mxu0 %v2809_v10  ;;  %1092 = vmatpush.msra.mxu1 %v2810_v1 }
 0x2ee   :  { %1112 = vmatpush.msra.mxu2 %v2811_v42  ;;  %1132 = vmatpush.msra.mxu3 %v2812_v15  ;;  %v1407_v42 = vld [vmem:[%s2572_s0 + $0x90] sm:$0xff] }
 0x34a   :  { %v756_v2 = vpop.f32.mrf.mxu0  ;;  %v776_v3 = vpop.f32.mrf.mxu1 }
 0x34b   :  { %v819_v8 = vadd.f32 %v1405_v4, %v756_v2  ;;  %v820_v17 = vadd.f32 %v1406_v49, %v776_v3 }
 0x34d   :  { %v1409_v20 = vmul.f32 -1.442695, %v819_v8  ;;  %v1410_v10 = vmul.f32 -1.442695, %v820_v17  ;;  %v1408_v8 = vld [vmem:[%s2572_s0 + $0x98] sm:$0xff] }
 0x34f   :  { %1501 = vpow2.f32 %v1409_v20 }
 0x350   :  { %1503 = vpow2.f32 %v1410_v10 }
 0x351   :  { %v796_v15 = vpop.f32.mrf.mxu2  ;;  %v816_v20 = vpop.f32.mrf.mxu3 }
 0x352   :  { %v821_v1 = vadd.f32 %v1407_v42, %v796_v15  ;;  %v822_v3 = vadd.f32 %v1408_v8, %v816_v20 }
 0x354   :  { %v1411_v18 = vmul.f32 -1.442695, %v821_v1 }
 0x355   :  { %v1502_v9 = vpop.eup %1501 }
 0x356   :  { %v1504_v19 = vpop.eup %1503  ;;  %v832_v14 = vadd.f32 1.0, %v1502_v9  ;;  %1505 = vpow2.f32 %v1411_v18 }
 0x357   :  { %v833_v11 = vadd.f32 1.0, %v1504_v19 }
 0x358   :  { %1507 = vrcp.f32 %v832_v14  ;;  %v846_v9 = vand.u32 2147483648, %v832_v14  ;;  %v844_v13 = vand.u32 2147483647, %v832_v14  ;;  %vm840_vm2 = vweird.f32 %v832_v14 }
 0x359   :  { %1509 = vrcp.f32 %v833_v11  ;;  %v861_v19 = vand.u32 2147483648, %v833_v11  ;;  %v859_v7 = vand.u32 2147483647, %v833_v11  ;;  %vm855_vm3 = vweird.f32 %v833_v11 }
 0x35a   :  { %v847_v20 = vor.u32 1.1754944e-38, %v846_v9  ;;  %vm845_vm6 = vcmp.eq.f32.partialorder %v844_v13, 8.507059e+37 }
 0x35b   :  { %vm860_vm7 = vcmp.eq.f32.partialorder %v859_v7, 8.507059e+37 }
 0x35c   :  { %v1506_v4 = vpop.eup %1505 }
 0x35d   :  { %v834_v2 = vadd.f32 1.0, %v1506_v4 }
 0x35e   :  { %v1508_v49 = vpop.eup %1507 }
 0x35f   :  { %v1510_v17 = vpop.eup %1509  ;;  %v836_v10 = vmul.f32 %v1508_v49, %v832_v14  ;;  %1511 = vrcp.f32 %v834_v2  ;;  %vm841_vm0 = vweird.f32 %v1508_v49  ;;  %vm870_vm9 = vweird.f32 %v834_v2 }
 0x360   :  { %v851_v15 = vmul.f32 %v1510_v17, %v833_v11  ;;  %1513 = vtanh.f32 %v822_v3  ;;  %vm856_vm1 = vweird.f32 %v1510_v17  ;;  %vm842_vm4 = vmor %vm840_vm2, %vm841_vm0 }
 0x361   :  { %v837_v1 = vsub.f32 1.0, %v836_v10  ;;  %vm857_vm5 = vmor %vm855_vm3, %vm856_vm1  ;;  %v862_v10 = vor.u32 1.1754944e-38, %v861_v19 }
 0x362   :  { %v852_v42 = vsub.f32 1.0, %v851_v15 }
 0x363   :  { %v838_v18 = vmul.f32 %v1508_v49, %v837_v1 }
 0x364   :  { %v853_v6 = vmul.f32 %v1510_v17, %v852_v42 }
 0x365   :  { %v1512_v16 = vpop.eup %1511  ;;  %v839_v37 = vadd.f32 %v1508_v49, %v838_v18 }
 0x366   :  { %v866_v8 = vmul.f32 %v1512_v16, %v834_v2  ;;  %v854_v4 = vadd.f32 %v1510_v17, %v853_v6  ;;  %v1514_v3 = vpop.eup %1513  ;;  %vm871_vm8 = vweird.f32 %v1512_v16  ;;  %v876_v6 = vand.u32 2147483648, %v834_v2 }
 0x367   :  { %v843_v15 = vsel %vm842_vm4, %v1508_v49, %v839_v37  ;;  %v874_v37 = vand.u32 2147483647, %v834_v2  ;;  %vm872_vm10 = vmor %vm870_vm9, %vm871_vm8 }
 0x368   :  { %v867_v59 = vsub.f32 1.0, %v866_v8  ;;  %v848_v1 = vsel %vm845_vm6, %v847_v20, %v843_v15  ;;  %v858_v46 = vsel %vm857_vm5, %v1510_v17, %v854_v4  ;;  %v877_v49 = vor.u32 1.1754944e-38, %v876_v6 }
 0x369   :  { %v863_v42 = vsel %vm860_vm7, %v862_v10, %v858_v46  ;;  %v882_v51 = vmul.f32 %v1514_v3, %v848_v1  ;;  %vm875_vm11 = vcmp.eq.f32.partialorder %v874_v37, 8.507059e+37 }
 0x36a   :  { %v881_v12 = vmul.f32 %v863_v42, %v2377_v5  ;;  %v868_v18 = vmul.f32 %v1512_v16, %v867_v59 }
 0x36c   :  { %v2457_v14 = vadd.f32 %v882_v51, %v881_v12  ;;  %v869_v11 = vadd.f32 %v1512_v16, %v868_v18 }
 0x36e   :  { %1515 = vtanh.f32 %v2457_v14  ;;  %v873_v13 = vsel %vm872_vm10, %v1512_v16, %v869_v11  ;;  %v1415_v16 = vld [vmem:[%s2572_s0 + $0xb8] sm:$0xff] }
 0x36f   :  { %v878_v7 = vsel %vm875_vm11, %v877_v49, %v873_v13 }
 0x374   :  { %v1516_v17 = vpop.eup %1515 }
 0x375   :  { %v885_v46 = vmul.f32 %v1516_v17, %v878_v7 }
 0x377   :  { %914 = vmatmul.f32.vlgmr.msrb.gmra.mxu0 %v885_v46  ;;  %934 = vmatmul.f32.vlgmr.msrb.gmra.mxu1 %v885_v46 }
 0x378   :  { %954 = vmatmul.f32.vlgmr.msrb.gmra.mxu2 %v885_v46  ;;  %974 = vmatmul.f32.vlgmr.msrb.gmra.mxu3 %v885_v46 }
 0x379   :  { %1216 = vmatpush.msrb.mxu0 %v2172_v50  ;;  %1236 = vmatpush.msrb.mxu1 %v2175_v21  ;;  %v2813_v50 = vld [vmem:[#allocation7_spill] sm:$0xff]  ;;  %v2814_v21 = vld [vmem:[#allocation8_spill] sm:$0xff] }
 0x37a   :  { %1256 = vmatpush.msrb.mxu2 %v2178_v22  ;;  %1276 = vmatpush.msrb.mxu3 %v2181_v23  ;;  %v2815_v22 = vld [vmem:[#allocation21_spill] sm:$0xff] }
 0x37b   :  { %1217 = vmatpush.msrb.mxu0 %v2184_v24  ;;  %1237 = vmatpush.msrb.mxu1 %v2187_v25  ;;  %v2816_v23 = vld [vmem:[#allocation9_spill] sm:$0xff]  ;;  %v2817_v24 = vld [vmem:[#allocation10_spill] sm:$0xff]  ;;  %v2818_v25 = vld [vmem:[#allocation11_spill] sm:$0xff] }
 0x37c   :  { %1257 = vmatpush.msrb.mxu2 %v2190_v26  ;;  %1277 = vmatpush.msrb.mxu3 %v2193_v27  ;;  %v2819_v26 = vld [vmem:[#allocation25_spill] sm:$0xff]  ;;  %v2820_v27 = vld [vmem:[#allocation12_spill] sm:$0xff] }
 0x37d   :  { %1218 = vmatpush.msrb.mxu0 %v2196_v28  ;;  %1238 = vmatpush.msrb.mxu1 %v2199_v29  ;;  %v2821_v28 = vld [vmem:[#allocation13_spill] sm:$0xff]  ;;  %v2822_v29 = vld [vmem:[#allocation14_spill] sm:$0xff] }
 0x37e   :  { %1258 = vmatpush.msrb.mxu2 %v2202_v30  ;;  %1278 = vmatpush.msrb.mxu3 %v2205_v31  ;;  %v2823_v30 = vld [vmem:[#allocation29_spill] sm:$0xff]  ;;  %v2824_v31 = vld [vmem:[#allocation15_spill] sm:$0xff] }
 0x37f   :  { %1219 = vmatpush.msrb.mxu0 %v2208_v32  ;;  %1239 = vmatpush.msrb.mxu1 %v2211_v33  ;;  %v2825_v32 = vld [vmem:[#allocation16_spill] sm:$0xff]  ;;  %v2826_v33 = vld [vmem:[#allocation17_spill] sm:$0xff] }
 0x380   :  { %1259 = vmatpush.msrb.mxu2 %v2214_v35  ;;  %1279 = vmatpush.msrb.mxu3 %v2217_v39  ;;  %v2827_v35 = vld [vmem:[#allocation30_spill] sm:$0xff] }
 0x381   :  { %1220 = vmatpush.msrb.mxu0 %v2220_v43  ;;  %1240 = vmatpush.msrb.mxu1 %v2223_v47  ;;  %v2828_v39 = vld [vmem:[#allocation18_spill] sm:$0xff]  ;;  %v2829_v43 = vld [vmem:[#allocation19_spill] sm:$0xff]  ;;  %v2830_v47 = vld [vmem:[#allocation20_spill] sm:$0xff] }
 0x382   :  { %1260 = vmatpush.msrb.mxu2 %v2226_v60  ;;  %1280 = vmatpush.msrb.mxu3 %v2229_v63  ;;  %v2831_v60 = vld [vmem:[#allocation31_spill] sm:$0xff]  ;;  %v2832_v63 = vld [vmem:[#allocation22_spill] sm:$0xff] }
 0x383   :  { %1221 = vmatpush.msrb.mxu0 %v2232_v34  ;;  %1241 = vmatpush.msrb.mxu1 %v2235_v36  ;;  %v2833_v34 = vld [vmem:[#allocation23_spill] sm:$0xff]  ;;  %v2834_v36 = vld [vmem:[#allocation24_spill] sm:$0xff] }
 0x384   :  { %1261 = vmatpush.msrb.mxu2 %v2238_v40  ;;  %1281 = vmatpush.msrb.mxu3 %v2241_v56  ;;  %v2835_v40 = vld [vmem:[#allocation32_spill] sm:$0xff]  ;;  %v2836_v56 = vld [vmem:[#allocation26_spill] sm:$0xff] }
 0x385   :  { %1222 = vmatpush.msrb.mxu0 %v2244_v44  ;;  %1242 = vmatpush.msrb.mxu1 %v2247_v54  ;;  %v2837_v44 = vld [vmem:[#allocation27_spill] sm:$0xff]  ;;  %v2838_v54 = vld [vmem:[#allocation28_spill] sm:$0xff] }
 0x386   :  { %1262 = vmatpush.msrb.mxu2 %v2250_v53  ;;  %1282 = vmatpush.msrb.mxu3 %v2253_v61  ;;  %v1412_v53 = vld [vmem:[%s2572_s0 + $0xa0] sm:$0xff]  ;;  %v1413_v61 = vld [vmem:[%s2572_s0 + $0xa8] sm:$0xff] }
 0x387   :  { %1223 = vmatpush.msrb.mxu0 %v2256_v62  ;;  %1243 = vmatpush.msrb.mxu1 %v2259_v45 }
 0x388   :  { %1263 = vmatpush.msrb.mxu2 %v2262_v57  ;;  %1283 = vmatpush.msrb.mxu3 %v2265_v0 }
 0x389   :  { %1224 = vmatpush.msrb.mxu0 %v2268_v55  ;;  %1244 = vmatpush.msrb.mxu1 %v2271_v38 }
 0x38a   :  { %1264 = vmatpush.msrb.mxu2 %v2274_v41  ;;  %1284 = vmatpush.msrb.mxu3 %v2277_v58  ;;  %v1414_v41 = vld [vmem:[%s2572_s0 + $0xb0] sm:$0xff] }
 0x38b   :  { %1225 = vmatpush.msrb.mxu0 %v2280_v52  ;;  %1245 = vmatpush.msrb.mxu1 %v2283_v48 }
 0x38c   :  { %1265 = vmatpush.msrb.mxu2 %v2813_v50  ;;  %1285 = vmatpush.msrb.mxu3 %v2814_v21 }
 0x38d   :  { %1226 = vmatpush.msrb.mxu0 %v2815_v22  ;;  %1246 = vmatpush.msrb.mxu1 %v2816_v23 }
 0x38e   :  { %1266 = vmatpush.msrb.mxu2 %v2817_v24  ;;  %1286 = vmatpush.msrb.mxu3 %v2818_v25 }
 0x38f   :  { %1227 = vmatpush.msrb.mxu0 %v2819_v26  ;;  %1247 = vmatpush.msrb.mxu1 %v2820_v27 }
 0x390   :  { %1267 = vmatpush.msrb.mxu2 %v2821_v28  ;;  %1287 = vmatpush.msrb.mxu3 %v2822_v29 }
 0x391   :  { %1228 = vmatpush.msrb.mxu0 %v2823_v30  ;;  %1248 = vmatpush.msrb.mxu1 %v2824_v31 }
 0x392   :  { %1268 = vmatpush.msrb.mxu2 %v2825_v32  ;;  %1288 = vmatpush.msrb.mxu3 %v2826_v33 }
 0x393   :  { %1229 = vmatpush.msrb.mxu0 %v2827_v35  ;;  %1249 = vmatpush.msrb.mxu1 %v2828_v39 }
 0x394   :  { %1269 = vmatpush.msrb.mxu2 %v2829_v43  ;;  %1289 = vmatpush.msrb.mxu3 %v2830_v47 }
 0x395   :  { %1230 = vmatpush.msrb.mxu0 %v2831_v60  ;;  %1250 = vmatpush.msrb.mxu1 %v2832_v63 }
 0x396   :  { %1270 = vmatpush.msrb.mxu2 %v2833_v34  ;;  %1290 = vmatpush.msrb.mxu3 %v2834_v36  ;;  %v1420_v34 = vld [vmem:[%s2572_s0 + $0xc8] sm:$0xff] }
 0x397   :  { %1231 = vmatpush.msrb.mxu0 %v2835_v40  ;;  %1251 = vmatpush.msrb.mxu1 %v2836_v56 }
 0x398   :  { %1271 = vmatpush.msrb.mxu2 %v2837_v44  ;;  %1291 = vmatpush.msrb.mxu3 %v2838_v54 }
 0x3f4   :  { %v915_v62 = vpop.f32.mrf.mxu0  ;;  %v935_v45 = vpop.f32.mrf.mxu1 }
 0x3f5   :  { %v978_v57 = vadd.f32 %v1412_v53, %v915_v62  ;;  %v979_v0 = vadd.f32 %v1413_v61, %v935_v45  ;;  %v1421_v61 = vld [vmem:[%s2572_s0 + $0xd0] sm:$0xff] }
 0x3f7   :  { %v1416_v55 = vmul.f32 -1.442695, %v978_v57  ;;  %v1417_v38 = vmul.f32 -1.442695, %v979_v0 }
 0x3f9   :  { %1517 = vpow2.f32 %v1416_v55 }
 0x3fa   :  { %1519 = vpow2.f32 %v1417_v38 }
 0x3fb   :  { %v955_v58 = vpop.f32.mrf.mxu2  ;;  %v975_v2 = vpop.f32.mrf.mxu3 }
 0x3fc   :  { %v980_v52 = vadd.f32 %v1414_v41, %v955_v58  ;;  %v981_v20 = vadd.f32 %v1415_v16, %v975_v2  ;;  %v1422_v58 = vld [vmem:[%s2572_s0 + $0xd8] sm:$0xff] }
 0x3fe   :  { %v1418_v48 = vmul.f32 -1.442695, %v980_v52 }
 0x3ff   :  { %v1518_v5 = vpop.eup %1517 }
 0x400   :  { %v1520_v12 = vpop.eup %1519  ;;  %v991_v51 = vadd.f32 1.0, %v1518_v5  ;;  %1521 = vpow2.f32 %v1418_v48 }
 0x401   :  { %v992_v59 = vadd.f32 1.0, %v1520_v12 }
 0x402   :  { %1523 = vrcp.f32 %v991_v51  ;;  %v1005_v42 = vand.u32 2147483648, %v991_v51  ;;  %v1003_v6 = vand.u32 2147483647, %v991_v51  ;;  %vm999_vm14 = vweird.f32 %v991_v51 }
 0x403   :  { %1525 = vrcp.f32 %v992_v59  ;;  %v1020_v18 = vand.u32 2147483648, %v992_v59  ;;  %v1018_v13 = vand.u32 2147483647, %v992_v59  ;;  %vm1014_vm15 = vweird.f32 %v992_v59 }
 0x404   :  { %v1006_v46 = vor.u32 1.1754944e-38, %v1005_v42  ;;  %vm1004_vm2 = vcmp.eq.f32.partialorder %v1003_v6, 8.507059e+37 }
 0x405   :  { %v1021_v21 = vor.u32 1.1754944e-38, %v1020_v18  ;;  %vm1019_vm3 = vcmp.eq.f32.partialorder %v1018_v13, 8.507059e+37 }
 0x406   :  { %v1522_v9 = vpop.eup %1521 }
 0x407   :  { %v993_v19 = vadd.f32 1.0, %v1522_v9 }
 0x408   :  { %v1524_v8 = vpop.eup %1523 }
 0x409   :  { %v1526_v4 = vpop.eup %1525  ;;  %v995_v10 = vmul.f32 %v1524_v8, %v991_v51  ;;  %1527 = vrcp.f32 %v993_v19  ;;  %vm1000_vm12 = vweird.f32 %v1524_v8  ;;  %v1035_v33 = vand.u32 2147483648, %v993_v19 }
 0x40a   :  { %v1010_v15 = vmul.f32 %v1526_v4, %v992_v59  ;;  %1529 = vtanh.f32 %v981_v20  ;;  %vm1015_vm13 = vweird.f32 %v1526_v4  ;;  %vm1001_vm0 = vmor %vm999_vm14, %vm1000_vm12  ;;  %vm1029_vm5 = vweird.f32 %v993_v19 }
 0x40b   :  { %v996_v3 = vsub.f32 1.0, %v995_v10  ;;  %vm1016_vm1 = vmor %vm1014_vm15, %vm1015_vm13  ;;  %v1033_v35 = vand.u32 2147483647, %v993_v19  ;;  %v1036_v43 = vor.u32 1.1754944e-38, %v1035_v33 }
 0x40c   :  { %v1011_v1 = vsub.f32 1.0, %v1010_v15 }
 0x40d   :  { %v997_v11 = vmul.f32 %v1524_v8, %v996_v3  ;;  %vm1034_vm7 = vcmp.eq.f32.partialorder %v1033_v35, 8.507059e+37  ;;  %v1427_v35 = vld [vmem:[%s2572_s0 + $0xe8] sm:$0xff] }
 0x40e   :  { %v1012_v37 = vmul.f32 %v1526_v4, %v1011_v1 }
 0x40f   :  { %v1528_v49 = vpop.eup %1527  ;;  %v998_v17 = vadd.f32 %v1524_v8, %v997_v11 }
 0x410   :  { %v1025_v7 = vmul.f32 %v1528_v49, %v993_v19  ;;  %v1013_v50 = vadd.f32 %v1526_v4, %v1012_v37  ;;  %v1530_v23 = vpop.eup %1529  ;;  %vm1030_vm4 = vweird.f32 %v1528_v49 }
 0x411   :  { %v1002_v22 = vsel %vm1001_vm0, %v1524_v8, %v998_v17  ;;  %vm1031_vm6 = vmor %vm1029_vm5, %vm1030_vm4 }
 0x412   :  { %v1026_v24 = vsub.f32 1.0, %v1025_v7  ;;  %v1007_v25 = vsel %vm1004_vm2, %v1006_v46, %v1002_v22  ;;  %v1017_v26 = vsel %vm1016_vm1, %v1526_v4, %v1013_v50 }
 0x413   :  { %v1022_v27 = vsel %vm1019_vm3, %v1021_v21, %v1017_v26  ;;  %v1041_v28 = vmul.f32 %v1530_v23, %v1007_v25 }
 0x414   :  { %v1040_v29 = vmul.f32 %v1022_v27, %v2457_v14  ;;  %v1027_v30 = vmul.f32 %v1528_v49, %v1026_v24  ;;  %v1419_v14 = vld [vmem:[%s2572_s0 + $0xc0] sm:$0xff] }
 0x416   :  { %v2537_v31 = vadd.f32 %v1041_v28, %v1040_v29  ;;  %v1028_v32 = vadd.f32 %v1528_v49, %v1027_v30 }
 0x418   :  { %1531 = vtanh.f32 %v2537_v31  ;;  %v1032_v39 = vsel %vm1031_vm6, %v1528_v49, %v1028_v32 }
 0x419   :  { %v1037_v60 = vsel %vm1034_vm7, %v1036_v43, %v1032_v39 }
 0x41e   :  { %v1532_v47 = vpop.eup %1531 }
 0x41f   :  { %v1044_v63 = vmul.f32 %v1532_v47, %v1037_v60 }
 0x421   :  { %1073 = vmatmul.f32.vlgmr.msra.gmra.mxu0 %v1044_v63  ;;  %1093 = vmatmul.f32.vlgmr.msra.gmra.mxu1 %v1044_v63 }
 0x422   :  { %1113 = vmatmul.f32.vlgmr.msra.gmra.mxu2 %v1044_v63  ;;  %1133 = vmatmul.f32.vlgmr.msra.gmra.mxu3 %v1044_v63 }
 0x49e   :  { %v1074_v36 = vpop.f32.mrf.mxu0  ;;  %v1094_v40 = vpop.f32.mrf.mxu1 }
 0x49f   :  { %v1137_v56 = vadd.f32 %v1419_v14, %v1074_v36  ;;  %v1138_v44 = vadd.f32 %v1420_v34, %v1094_v40  ;;  %v1428_v34 = vld [vmem:[%s2572_s0 + $0xf0] sm:$0xff] }
 0x4a1   :  { %v1423_v54 = vmul.f32 -1.442695, %v1137_v56  ;;  %v1424_v53 = vmul.f32 -1.442695, %v1138_v44 }
 0x4a3   :  { %1533 = vpow2.f32 %v1423_v54 }
 0x4a4   :  { %1535 = vpow2.f32 %v1424_v53 }
 0x4a5   :  { %v1114_v62 = vpop.f32.mrf.mxu2  ;;  %v1134_v52 = vpop.f32.mrf.mxu3 }
 0x4a6   :  { %v1139_v45 = vadd.f32 %v1421_v61, %v1114_v62  ;;  %v1140_v51 = vadd.f32 %v1422_v58, %v1134_v52  ;;  %v1429_v62 = vld [vmem:[%s2572_s0 + $0xf8] sm:$0xff] }
 0x4a8   :  { %v1425_v57 = vmul.f32 -1.442695, %v1139_v45 }
 0x4a9   :  { %v1534_v0 = vpop.eup %1533 }
 0x4aa   :  { %v1536_v55 = vpop.eup %1535  ;;  %v1150_v38 = vadd.f32 1.0, %v1534_v0  ;;  %1537 = vpow2.f32 %v1425_v57 }
 0x4ab   :  { %v1151_v41 = vadd.f32 1.0, %v1536_v55 }
 0x4ac   :  { %1539 = vrcp.f32 %v1150_v38  ;;  %v1164_v8 = vand.u32 2147483648, %v1150_v38  ;;  %v1162_v10 = vand.u32 2147483647, %v1150_v38  ;;  %vm1158_vm10 = vweird.f32 %v1150_v38 }
 0x4ad   :  { %1541 = vrcp.f32 %v1151_v41  ;;  %v1179_v20 = vand.u32 2147483648, %v1151_v41  ;;  %v1177_v3 = vand.u32 2147483647, %v1151_v41  ;;  %vm1173_vm11 = vweird.f32 %v1151_v41 }
 0x4ae   :  { %v1165_v11 = vor.u32 1.1754944e-38, %v1164_v8  ;;  %vm1163_vm14 = vcmp.eq.f32.partialorder %v1162_v10, 8.507059e+37 }
 0x4af   :  { %v1180_v37 = vor.u32 1.1754944e-38, %v1179_v20  ;;  %vm1178_vm15 = vcmp.eq.f32.partialorder %v1177_v3, 8.507059e+37 }
 0x4b0   :  { %v1538_v48 = vpop.eup %1537 }
 0x4b1   :  { %v1152_v5 = vadd.f32 1.0, %v1538_v48 }
 0x4b2   :  { %v1540_v12 = vpop.eup %1539 }
 0x4b3   :  { %v1542_v59 = vpop.eup %1541  ;;  %v1154_v16 = vmul.f32 %v1540_v12, %v1150_v38  ;;  %1543 = vrcp.f32 %v1152_v5  ;;  %vm1159_vm8 = vweird.f32 %v1540_v12  ;;  %v1194_v26 = vand.u32 2147483648, %v1152_v5 }
 0x4b4   :  { %v1169_v2 = vmul.f32 %v1542_v59, %v1151_v41  ;;  %1545 = vtanh.f32 %v1140_v51  ;;  %vm1174_vm9 = vweird.f32 %v1542_v59  ;;  %vm1160_vm12 = vmor %vm1158_vm10, %vm1159_vm8  ;;  %vm1188_vm1 = vweird.f32 %v1152_v5 }
 0x4b5   :  { %v1155_v9 = vsub.f32 1.0, %v1154_v16  ;;  %vm1175_vm13 = vmor %vm1173_vm11, %vm1174_vm9  ;;  %v1192_v27 = vand.u32 2147483647, %v1152_v5  ;;  %v1195_v29 = vor.u32 1.1754944e-38, %v1194_v26 }
 0x4b6   :  { %v1170_v19 = vsub.f32 1.0, %v1169_v2 }
 0x4b7   :  { %v1156_v4 = vmul.f32 %v1540_v12, %v1155_v9  ;;  %vm1193_vm3 = vcmp.eq.f32.partialorder %v1192_v27, 8.507059e+37 }
 0x4b8   :  { %v1171_v15 = vmul.f32 %v1542_v59, %v1170_v19 }
 0x4b9   :  { %v1544_v1 = vpop.eup %1543  ;;  %v1157_v42 = vadd.f32 %v1540_v12, %v1156_v4 }
 0x4ba   :  { %v1184_v18 = vmul.f32 %v1544_v1, %v1152_v5  ;;  %v1172_v6 = vadd.f32 %v1542_v59, %v1171_v15  ;;  %v1546_v49 = vpop.eup %1545  ;;  %vm1189_vm0 = vweird.f32 %v1544_v1 }
 0x4bb   :  { %v1161_v13 = vsel %vm1160_vm12, %v1540_v12, %v1157_v42  ;;  %vm1190_vm2 = vmor %vm1188_vm1, %vm1189_vm0 }
 0x4bc   :  { %v1185_v17 = vsub.f32 1.0, %v1184_v18  ;;  %v1166_v7 = vsel %vm1163_vm14, %v1165_v11, %v1161_v13  ;;  %v1176_v46 = vsel %vm1175_vm13, %v1542_v59, %v1172_v6 }
 0x4bd   :  { %v1181_v50 = vsel %vm1178_vm15, %v1180_v37, %v1176_v46  ;;  %v1200_v21 = vmul.f32 %v1546_v49, %v1166_v7 }
 0x4be   :  { %v1199_v22 = vmul.f32 %v1181_v50, %v2537_v31  ;;  %v1186_v23 = vmul.f32 %v1544_v1, %v1185_v17  ;;  %v1426_v31 = vld [vmem:[%s2572_s0 + $0xe0] sm:$0xff] }
 0x4c0   :  { %v2553_v24 = vadd.f32 %v1200_v21, %v1199_v22  ;;  %v1187_v25 = vadd.f32 %v1544_v1, %v1186_v23 }
 0x4c2   :  { %1547 = vtanh.f32 %v2553_v24  ;;  %v1191_v28 = vsel %vm1190_vm2, %v1544_v1, %v1187_v25 }
 0x4c3   :  { %v1196_v32 = vsel %vm1193_vm3, %v1195_v29, %v1191_v28 }
 0x4c8   :  { %v1548_v30 = vpop.eup %1547 }
 0x4c9   :  { %v1203_v33 = vmul.f32 %v1548_v30, %v1196_v32 }
 0x4cb   :  { %1232 = vmatmul.f32.vlgmr.msrb.gmra.mxu0 %v1203_v33  ;;  %1252 = vmatmul.f32.vlgmr.msrb.gmra.mxu1 %v1203_v33 }
 0x4cc   :  { %1272 = vmatmul.f32.vlgmr.msrb.gmra.mxu2 %v1203_v33  ;;  %1292 = vmatmul.f32.vlgmr.msrb.gmra.mxu3 %v1203_v33 }
 0x548   :  { %v1233_v39 = vpop.f32.mrf.mxu0  ;;  %v1253_v43 = vpop.f32.mrf.mxu1 }
 0x549   :  { %v1296_v47 = vadd.f32 %v1426_v31, %v1233_v39  ;;  %v1297_v60 = vadd.f32 %v1427_v35, %v1253_v43 }
 0x54b   :  { %v1430_v63 = vmul.f32 -1.442695, %v1296_v47  ;;  %v1431_v14 = vmul.f32 -1.442695, %v1297_v60 }
 0x54d   :  { %1549 = vpow2.f32 %v1430_v63 }
 0x54e   :  { %1551 = vpow2.f32 %v1431_v14 }
 0x54f   :  { %v1273_v36 = vpop.f32.mrf.mxu2  ;;  %v1293_v45 = vpop.f32.mrf.mxu3 }
 0x550   :  { %v1298_v40 = vadd.f32 %v1428_v34, %v1273_v36  ;;  %v1299_v38 = vadd.f32 %v1429_v62, %v1293_v45 }
 0x552   :  { %v1432_v56 = vmul.f32 -1.442695, %v1298_v40 }
 0x553   :  { %v1550_v44 = vpop.eup %1549 }
 0x554   :  { %v1552_v54 = vpop.eup %1551  ;;  %v1309_v53 = vadd.f32 1.0, %v1550_v44  ;;  %1553 = vpow2.f32 %v1432_v56 }
 0x555   :  { %v1310_v61 = vadd.f32 1.0, %v1552_v54 }
 0x556   :  { %1555 = vrcp.f32 %v1309_v53  ;;  %v1323_v12 = vand.u32 2147483648, %v1309_v53  ;;  %v1321_v16 = vand.u32 2147483647, %v1309_v53  ;;  %vm1317_vm6 = vweird.f32 %v1309_v53 }
 0x557   :  { %1557 = vrcp.f32 %v1310_v61  ;;  %v1338_v51 = vand.u32 2147483648, %v1310_v61  ;;  %v1336_v9 = vand.u32 2147483647, %v1310_v61  ;;  %vm1332_vm7 = vweird.f32 %v1310_v61 }
 0x558   :  { %v1324_v4 = vor.u32 1.1754944e-38, %v1323_v12  ;;  %vm1322_vm10 = vcmp.eq.f32.partialorder %v1321_v16, 8.507059e+37 }
 0x559   :  { %v1339_v15 = vor.u32 1.1754944e-38, %v1338_v51  ;;  %vm1337_vm11 = vcmp.eq.f32.partialorder %v1336_v9, 8.507059e+37 }
 0x55a   :  { %v1554_v57 = vpop.eup %1553 }
 0x55b   :  { %v1311_v0 = vadd.f32 1.0, %v1554_v57 }
 0x55c   :  { %v1556_v55 = vpop.eup %1555 }
 0x55d   :  { %v1558_v41 = vpop.eup %1557  ;;  %v1313_v58 = vmul.f32 %v1556_v55, %v1309_v53  ;;  %1559 = vrcp.f32 %v1311_v0  ;;  %vm1318_vm4 = vweird.f32 %v1556_v55  ;;  %v1353_v46 = vand.u32 2147483648, %v1311_v0 }
 0x55e   :  { %v1328_v52 = vmul.f32 %v1558_v41, %v1310_v61  ;;  %1561 = vtanh.f32 %v1299_v38  ;;  %vm1333_vm5 = vweird.f32 %v1558_v41  ;;  %vm1319_vm8 = vmor %vm1317_vm6, %vm1318_vm4  ;;  %vm1347_vm13 = vweird.f32 %v1311_v0 }
 0x55f   :  { %v1314_v48 = vsub.f32 1.0, %v1313_v58  ;;  %vm1334_vm9 = vmor %vm1332_vm7, %vm1333_vm5  ;;  %v1351_v50 = vand.u32 2147483647, %v1311_v0  ;;  %v1354_v22 = vor.u32 1.1754944e-38, %v1353_v46 }
 0x560   :  { %v1329_v5 = vsub.f32 1.0, %v1328_v52 }
 0x561   :  { %v1315_v59 = vmul.f32 %v1556_v55, %v1314_v48  ;;  %vm1352_vm15 = vcmp.eq.f32.partialorder %v1351_v50, 8.507059e+37 }
 0x562   :  { %v1330_v2 = vmul.f32 %v1558_v41, %v1329_v5 }
 0x563   :  { %v1560_v19 = vpop.eup %1559  ;;  %v1316_v8 = vadd.f32 %v1556_v55, %v1315_v59 }
 0x564   :  { %v1343_v20 = vmul.f32 %v1560_v19, %v1311_v0  ;;  %v1331_v10 = vadd.f32 %v1558_v41, %v1330_v2  ;;  %v1562_v1 = vpop.eup %1561  ;;  %vm1348_vm12 = vweird.f32 %v1560_v19 }
 0x565   :  { %v1320_v3 = vsel %vm1319_vm8, %v1556_v55, %v1316_v8  ;;  %vm1349_vm14 = vmor %vm1347_vm13, %vm1348_vm12 }
 0x566   :  { %v1344_v42 = vsub.f32 1.0, %v1343_v20  ;;  %v1325_v18 = vsel %vm1322_vm10, %v1324_v4, %v1320_v3  ;;  %v1335_v11 = vsel %vm1334_vm9, %v1558_v41, %v1331_v10 }
 0x567   :  { %v1340_v6 = vsel %vm1337_vm11, %v1339_v15, %v1335_v11  ;;  %v1359_v37 = vmul.f32 %v1562_v1, %v1325_v18 }
 0x568   :  { %v1345_v13 = vmul.f32 %v1560_v19, %v1344_v42  ;;  %v1358_v49 = vmul.f32 %v1340_v6, %v2553_v24 }
 0x56a   :  { %v1360_v17 = vadd.f32 %v1359_v37, %v1358_v49  ;;  %v1346_v7 = vadd.f32 %v1560_v19, %v1345_v13 }
 0x56c   :  { %1563 = vtanh.f32 %v1360_v17  ;;  %v1350_v21 = vsel %vm1349_vm14, %v1560_v19, %v1346_v7 }
 0x56d   :  { %v1355_v25 = vsel %vm1352_vm15, %v1354_v22, %v1350_v21 }
 0x572   :  { %v1564_v23 = vpop.eup %1563 }
 0x573   :  { %v1362_v26 = vmul.f32 %v1564_v23, %v1355_v25 }
 0x575   :  { %1375 = vst [vmem:[%s2574_s2] sm:$0xff] %v1362_v26 }
 0x576   :  { %1380 = vsyncpa [#allocation5], 1 }

</bundles_post_ra>
